<compile_context>
chip_gen: v7x
topology: tpu7x:2x2x1
jax: 0.10.0
libtpu: 0.0.40
codegen_flags: <defaults>
</compile_context>

<pallas_src>
import functools

import jax
import jax.numpy as jnp
import numpy as np
from jax import lax
from jax.experimental import pallas as pl
from jax.experimental.pallas import tpu as pltpu


def _round_up(x, m):
    return (x + m - 1) // m * m


def _dkt_lstm_kernel(
    cate_ref, cont_ref,                 # (S*bt, E) bf16, (S*bt, C) bf16  (2D time-major)
    wcate_ref, wcont_ref, bcomb_ref,    # folded comb projection: bf16, bf16, (1,H) f32
    wih_ref, whh_ref, blstm_ref,        # fused LSTM: (L,H,4H) bf16 x2, (L,1,4H) f32
    wr_ref, br_ref,                     # folded reg head: (1,H) f32, (1,1) f32
    out_ref,                            # (S, bt) f32 time-major predictions
    x_scr, xp_scr,                      # VMEM: (S*bt, H) f32, (S*bt, 4H) f32
    *, S, bt,
):
    H = wcate_ref.shape[1]
    L = wih_ref.shape[0]

    # ---- folded forward_comb: X = cate @ (Wcate.Wcomb_top) + cont @ (Wcont.Wcomb_bot) + b
    x_scr[...] = (
        jnp.dot(cate_ref[...], wcate_ref[...], preferred_element_type=jnp.float32)
        + jnp.dot(cont_ref[...], wcont_ref[...], preferred_element_type=jnp.float32)
        + bcomb_ref[...])                                      # (S*bt, H) f32

    unroll = S if S <= 16 else 8    # bounded unroll: LLO visibility without vreg spills

    # ---- stacked LSTM, zero initial (h, c), batch_first semantics ------------------
    for layer in range(L):                                     # static python loop (small L)
        wih_l = wih_ref[layer]                                 # (H, 4H) bf16, [i|f|g|o]
        whh_l = whh_ref[layer]                                 # (H, 4H) bf16
        b_l = blstm_ref[layer]                                 # (1, 4H) f32 (b_ih + b_hh)

        # Hoisted input projection for the whole sequence (off the serial h->h path).
        xp_scr[...] = (jnp.dot(x_scr[...].astype(jnp.bfloat16), wih_l,
                               preferred_element_type=jnp.float32) + b_l)
        # TODO(synk): for very long S on v7x (64 MiB VMEM), chunk this hoist / store bf16.

        def step(t, carry):
            h, c = carry                                       # (bt, H) f32, carried in vregs
            row = pl.multiple_of(t * bt, bt)                   # sublane-aligned slice start
            gates = xp_scr[pl.ds(row, bt), :] + jnp.dot(
                h.astype(jnp.bfloat16), whh_l,
                preferred_element_type=jnp.float32)            # (bt, 4H) f32
            sig = jax.nn.sigmoid(gates)                        # full-width EUP pass
            tnh = jnp.tanh(gates)
            i_g = sig[:, 0:H]
            f_g = sig[:, H:2 * H]
            g_g = tnh[:, 2 * H:3 * H]
            o_g = sig[:, 3 * H:4 * H]
            c_new = f_g * c + i_g * g_g
            h_new = o_g * jnp.tanh(c_new)
            x_scr[pl.ds(row, bt), :] = h_new                   # in place: next layer's input
            return (h_new, c_new)

        zero = jnp.zeros((bt, H), jnp.float32)
        lax.fori_loop(0, S, step, (zero, zero), unroll=unroll)
        # nn.LSTM inter-layer dropout is identity in eval mode.

    # ---- folded reg head: sigmoid(y @ (Wr1.Wr2.Wr3) + folded bias), time-major (S, bt)
    r = jnp.sum(x_scr[...] * wr_ref[...], axis=-1, keepdims=True) + br_ref[...]  # (S*bt, 1)
    out_ref[...] = jax.nn.sigmoid(r).reshape(S, bt)


def dkt_lstm_forward(params, model_input, *, batch_tile=None):
    """model_input mirrors the PyTorch module: [cate_0, ..., cate_{n-1}, cont, mask]."""
    n_cate = len(params["emb"])
    cate_inputs = model_input[:n_cate]
    cont_x = model_input[n_cate]
    # mask = model_input[-1] is extracted but unused in the reference forward.

    B, S = cate_inputs[0].shape
    H = params["Wcate"].shape[1]
    hi = lax.Precision.HIGHEST

    # Embedding gathers (glue), then concat along feature axis, as in forward_comb.
    embs = [params["emb"][i][cate_inputs[i]] for i in range(n_cate)]   # each (B, S, H//3)
    cate_embed = jnp.concatenate(embs, axis=2).astype(jnp.float32)     # (B, S, E)
    cont_f = cont_x.astype(jnp.float32)                                # (B, S, C)
    E = cate_embed.shape[2]
    C = cont_f.shape[2]

    # ---- eval-mode algebraic folding (one-time, HIGHEST precision), then bf16 for MXU
    Wcomb_top = params["Wcomb"][:H]
    Wcomb_bot = params["Wcomb"][H:]
    Wcate_f = jnp.dot(params["Wcate"], Wcomb_top, precision=hi).astype(jnp.bfloat16)  # (E, H)
    Wcont_f = jnp.dot(params["Wcont"], Wcomb_bot, precision=hi).astype(jnp.bfloat16)  # (C, H)
    bcomb_f = (jnp.dot(params["bcate"], Wcomb_top, precision=hi)
               + jnp.dot(params["bcont"], Wcomb_bot, precision=hi)
               + params["bcomb"])                                      # (1, H) f32

    Wih_f = jnp.concatenate([params["Wih"][:, g] for g in range(4)],
                            axis=2).astype(jnp.bfloat16)               # (L, H, 4H)
    Whh_f = jnp.concatenate([params["Whh"][:, g] for g in range(4)],
                            axis=2).astype(jnp.bfloat16)               # (L, H, 4H)
    blstm_f = jnp.concatenate([params["blstm"][:, g] for g in range(4)], axis=2)  # (L,1,4H) f32

    Wr_f = jnp.dot(jnp.dot(params["Wr1"], params["Wr2"], precision=hi),
                   params["Wr3"], precision=hi)                        # (H, 1)
    wr_row = Wr_f.T                                                    # (1, H) f32
    br_f = (jnp.dot(jnp.dot(params["br1"], params["Wr2"], precision=hi),
                    params["Wr3"], precision=hi)
            + jnp.dot(params["br2"], params["Wr3"], precision=hi)
            + params["br3"])                                           # (1, 1) f32

    L = Wih_f.shape[0]

    # ---- batch tiling: sublane-aligned, big enough to fill the MXU M dimension.
    # For v7x dual-core scaling at production batch, pass batch_tile <= B//2 (mult. of 8).
    if batch_tile is None:
        bt = min(_round_up(B, 8), 128)
    else:
        bt = batch_tile
    assert bt % 8 == 0, "batch_tile must be a multiple of 8 (f32 sublane)"
    B_pad = _round_up(B, bt)
    nb = B_pad // bt

    # Per-tile 2D time-major layout (nb, S*bt, feat): row index within tile = t*bt + b_local.
    def to_tiles(x):
        F = x.shape[-1]
        x = jnp.pad(x, ((0, B_pad - B), (0, 0), (0, 0)))
        x = x.reshape(nb, bt, S, F).transpose(0, 2, 1, 3).reshape(nb, S * bt, F)
        return x.astype(jnp.bfloat16)

    cate_t = to_tiles(cate_embed)
    cont_t = to_tiles(cont_f)

    def wfull(shape):
        n = len(shape)
        return pl.BlockSpec(shape, lambda b: (0,) * n)

    kernel = functools.partial(_dkt_lstm_kernel, S=S, bt=bt)

    out = pl.pallas_call(
        kernel,
        out_shape=jax.ShapeDtypeStruct((nb, S, bt), jnp.float32),
        grid=(nb,),
        in_specs=[
            pl.BlockSpec((None, S * bt, E), lambda b: (b, 0, 0)),
            pl.BlockSpec((None, S * bt, C), lambda b: (b, 0, 0)),
            wfull((E, H)),
            wfull((C, H)),
            wfull((1, H)),
            wfull((L, H, 4 * H)),
            wfull((L, H, 4 * H)),
            wfull((L, 1, 4 * H)),
            wfull((1, H)),
            wfull((1, 1)),
        ],
        out_specs=pl.BlockSpec((None, S, bt), lambda b: (b, 0, 0)),
        scratch_shapes=[
            pltpu.VMEM((S * bt, H), jnp.float32),       # x_scr: layer input/output (in place)
            pltpu.VMEM((S * bt, 4 * H), jnp.float32),   # xp_scr: hoisted x @ Wih + b
        ],
        compiler_params=pltpu.CompilerParams(
            dimension_semantics=("parallel",)),
    )(cate_t, cont_t, Wcate_f, Wcont_f, bcomb_f,
      Wih_f, Whh_f, blstm_f, wr_row, br_f)

    # (nb, S, bt) time-major -> (B, S) batch-first; drop padded batch rows.
    preds = out.transpose(0, 2, 1).reshape(B_pad, S)[:B]
    return preds


def reference_forward(params, model_input):
    """Pure-JAX reference matching the PyTorch semantics (eval mode), no folding."""
    n_cate = len(params["emb"])
    cate_inputs = model_input[:n_cate]
    cont_x = model_input[n_cate].astype(jnp.float32)

    embs = [params["emb"][i][cate_inputs[i]] for i in range(n_cate)]
    cate_embed = jnp.concatenate(embs, axis=2)
    cate_p = cate_embed @ params["Wcate"] + params["bcate"]
    cont_p = cont_x @ params["Wcont"] + params["bcont"]
    X = jnp.concatenate([cate_p, cont_p], axis=-1) @ params["Wcomb"] + params["bcomb"]

    B, S, H = X.shape
    x = X
    for layer in range(params["Wih"].shape[0]):
        wih = params["Wih"][layer]
        whh = params["Whh"][layer]
        b = params["blstm"][layer]

        def step(carry, x_t):
            h, c = carry
            i = jax.nn.sigmoid(x_t @ wih[0] + h @ whh[0] + b[0])
            f = jax.nn.sigmoid(x_t @ wih[1] + h @ whh[1] + b[1])
            g = jnp.tanh(x_t @ wih[2] + h @ whh[2] + b[2])
            o = jax.nn.sigmoid(x_t @ wih[3] + h @ whh[3] + b[3])
            c_new = f * c + i * g
            h_new = o * jnp.tanh(c_new)
            return (h_new, c_new), h_new

        init = (jnp.zeros((B, H), jnp.float32), jnp.zeros((B, H), jnp.float32))
        _, ys = lax.scan(step, init, jnp.transpose(x, (1, 0, 2)))
        x = jnp.transpose(ys, (1, 0, 2))

    r = x @ params["Wr1"] + params["br1"]
    r = r @ params["Wr2"] + params["br2"]
    r = r @ params["Wr3"] + params["br3"]
    return jax.nn.sigmoid(r).reshape(B, -1)


def init_params(key, *, hidden_dim=32, n_cate=3, n_cont=4, n_layers=2, vocab=20):
    H = hidden_dim
    emb_dim = H // 3
    keys = iter(jax.random.split(key, 64))

    def u(shape, scale=0.2):
        return jax.random.uniform(next(keys), shape, jnp.float32, -scale, scale)

    return {
        "emb": [u((vocab + 1, emb_dim)) for _ in range(n_cate)],
        "Wcate": u((n_cate * emb_dim, H)), "bcate": u((1, H)),
        "Wcont": u((n_cont, H)), "bcont": u((1, H)),
        "Wcomb": u((2 * H, H)), "bcomb": u((1, H)),
        # blstm is the pre-summed PyTorch bias (b_ih + b_hh) per gate, order [i, f, g, o]
        "Wih": u((n_layers, 4, H, H)), "Whh": u((n_layers, 4, H, H)),
        "blstm": u((n_layers, 4, 1, H)),
        "Wr1": u((H, H)), "br1": u((1, H)),
        "Wr2": u((H, H)), "br2": u((1, H)),
        "Wr3": u((H, 1)), "br3": u((1, 1)),
    }


if __name__ == "__main__":
    B, S = 2, 8
    hidden_dim, n_cate, n_cont, n_layers, vocab = 32, 3, 4, 2, 20

    root = jax.random.PRNGKey(0)
    k_params, k_data = jax.random.split(root)
    params = init_params(k_params, hidden_dim=hidden_dim, n_cate=n_cate,
                         n_cont=n_cont, n_layers=n_layers, vocab=vocab)

    dkeys = jax.random.split(k_data, n_cate + 2)
    cate_inputs = [jax.random.randint(dkeys[i], (B, S), 0, vocab + 1, dtype=jnp.int32)
                   for i in range(n_cate)]
    cont_x = jax.random.normal(dkeys[n_cate], (B, S, n_cont), jnp.float32)
    mask = jnp.ones((B, S), jnp.float32)   # unused by forward, kept for interface parity
    model_input = cate_inputs + [cont_x, mask]

    preds = dkt_lstm_forward(params, model_input)
    preds = jax.block_until_ready(preds)
    assert preds.shape == (B, S)

    ref = reference_forward(params, model_input)
    # Tolerance accounts for explicit bf16 MXU operands in the kernel (vs. the f32
    # default-precision reference) plus eval-mode weight-folding FP reassociation.
    np.testing.assert_allclose(np.asarray(preds), np.asarray(ref), rtol=5e-3, atol=5e-3)

    print("KERNEL_OK")
</pallas_src>

<mosaic_0001>
module attributes {stable_mosaic.version = 11 : i64} {
  func.func @_dkt_lstm_kernel(%arg0: i32, %arg1: memref<1x64x30xbf16, #tpu.memory_space<vmem>>, %arg2: memref<1x64x4xbf16, #tpu.memory_space<vmem>>, %arg3: memref<30x32xbf16, #tpu.memory_space<vmem>>, %arg4: memref<4x32xbf16, #tpu.memory_space<vmem>>, %arg5: memref<1x32xf32, #tpu.memory_space<vmem>>, %arg6: memref<2x32x128xbf16, #tpu.memory_space<vmem>>, %arg7: memref<2x32x128xbf16, #tpu.memory_space<vmem>>, %arg8: memref<2x1x128xf32, #tpu.memory_space<vmem>>, %arg9: memref<1x32xf32, #tpu.memory_space<vmem>>, %arg10: memref<1x1xf32, #tpu.memory_space<vmem>>, %arg11: memref<1x8x8xf32, #tpu.memory_space<vmem>>, %arg12: memref<64x32xf32, #tpu.memory_space<vmem>>, %arg13: memref<64x128xf32, #tpu.memory_space<vmem>>) attributes {dimension_semantics = [#tpu.dimension_semantics<parallel>], iteration_bounds = array<i64: 1>, scalar_prefetch = 0 : i64, scratch_operands = 2 : i64, tpu.core_type = #tpu.core_type<tc>, window_params = [{transform_indices = @transform_0, window_bounds = array<i64: 1, 64, 30>}, {transform_indices = @transform_1, window_bounds = array<i64: 1, 64, 4>}, {pipeline_mode = #tpu.pipeline_mode<synchronous>, transform_indices = @transform_2, window_bounds = array<i64: 30, 32>}, {pipeline_mode = #tpu.pipeline_mode<synchronous>, transform_indices = @transform_3, window_bounds = array<i64: 4, 32>}, {pipeline_mode = #tpu.pipeline_mode<synchronous>, transform_indices = @transform_4, window_bounds = array<i64: 1, 32>}, {pipeline_mode = #tpu.pipeline_mode<synchronous>, transform_indices = @transform_5, window_bounds = array<i64: 2, 32, 128>}, {pipeline_mode = #tpu.pipeline_mode<synchronous>, transform_indices = @transform_6, window_bounds = array<i64: 2, 32, 128>}, {pipeline_mode = #tpu.pipeline_mode<synchronous>, transform_indices = @transform_7, window_bounds = array<i64: 2, 1, 128>}, {pipeline_mode = #tpu.pipeline_mode<synchronous>, transform_indices = @transform_8, window_bounds = array<i64: 1, 32>}, {pipeline_mode = #tpu.pipeline_mode<synchronous>, transform_indices = @transform_9, window_bounds = array<i64: 1, 1>}, {transform_indices = @transform_10, window_bounds = array<i64: 1, 8, 8>}]} {
    %c0 = arith.constant 0 : index
    %c0_0 = arith.constant 0 : index
    %c0_1 = arith.constant 0 : index
    %0 = vector.load %arg1[%c0, %c0_0, %c0_1] : memref<1x64x30xbf16, #tpu.memory_space<vmem>>, vector<1x64x30xbf16>
    %1 = vector.shape_cast %0 : vector<1x64x30xbf16> to vector<64x30xbf16>
    %c0_2 = arith.constant 0 : index
    %c0_3 = arith.constant 0 : index
    %2 = vector.load %arg3[%c0_2, %c0_3] : memref<30x32xbf16, #tpu.memory_space<vmem>>, vector<30x32xbf16>
    %cst = arith.constant dense<0.000000e+00> : vector<64x32xf32>
    %3 = tpu.matmul %1, %2, %cst {dimension_numbers = #tpu.dot_dimension_numbers<[1], [0], [0], [1], [0, 0, 1, 1], [], []>} : vector<64x30xbf16>, vector<30x32xbf16>, vector<64x32xf32> -> vector<64x32xf32>
    %c0_4 = arith.constant 0 : index
    %c0_5 = arith.constant 0 : index
    %c0_6 = arith.constant 0 : index
    %4 = vector.load %arg2[%c0_4, %c0_5, %c0_6] : memref<1x64x4xbf16, #tpu.memory_space<vmem>>, vector<1x64x4xbf16>
    %5 = vector.shape_cast %4 : vector<1x64x4xbf16> to vector<64x4xbf16>
    %c0_7 = arith.constant 0 : index
    %c0_8 = arith.constant 0 : index
    %6 = vector.load %arg4[%c0_7, %c0_8] : memref<4x32xbf16, #tpu.memory_space<vmem>>, vector<4x32xbf16>
    %cst_9 = arith.constant dense<0.000000e+00> : vector<64x32xf32>
    %7 = tpu.matmul %5, %6, %cst_9 {dimension_numbers = #tpu.dot_dimension_numbers<[1], [0], [0], [1], [0, 0, 1, 1], [], []>} : vector<64x4xbf16>, vector<4x32xbf16>, vector<64x32xf32> -> vector<64x32xf32>
    %8 = arith.addf %3, %7 : vector<64x32xf32>
    %c0_10 = arith.constant 0 : index
    %c0_11 = arith.constant 0 : index
    %9 = vector.load %arg5[%c0_10, %c0_11] : memref<1x32xf32, #tpu.memory_space<vmem>>, vector<1x32xf32>
    %10 = vector.broadcast %9 : vector<1x32xf32> to vector<64x32xf32>
    %11 = arith.addf %8, %10 : vector<64x32xf32>
    %c0_12 = arith.constant 0 : index
    %c0_13 = arith.constant 0 : index
    %12 = vector.load %arg12[%c0_12, %c0_13] : memref<64x32xf32, #tpu.memory_space<vmem>>, vector<64x32xf32>
    tpu.vector_store %arg12[%c0_12, %c0_13], %11 {strides = array<i32>} : memref<64x32xf32, #tpu.memory_space<vmem>>, vector<64x32xf32>,
    %c0_14 = arith.constant 0 : index
    %c0_15 = arith.constant 0 : index
    %c0_16 = arith.constant 0 : index
    %13 = vector.load %arg6[%c0_14, %c0_15, %c0_16] : memref<2x32x128xbf16, #tpu.memory_space<vmem>>, vector<1x32x128xbf16>
    %14 = vector.shape_cast %13 : vector<1x32x128xbf16> to vector<32x128xbf16>
    %c0_17 = arith.constant 0 : index
    %c0_18 = arith.constant 0 : index
    %c0_19 = arith.constant 0 : index
    %15 = vector.load %arg7[%c0_17, %c0_18, %c0_19] : memref<2x32x128xbf16, #tpu.memory_space<vmem>>, vector<1x32x128xbf16>
    %16 = vector.shape_cast %15 : vector<1x32x128xbf16> to vector<32x128xbf16>
    %c0_20 = arith.constant 0 : index
    %c0_21 = arith.constant 0 : index
    %c0_22 = arith.constant 0 : index
    %17 = vector.load %arg8[%c0_20, %c0_21, %c0_22] : memref<2x1x128xf32, #tpu.memory_space<vmem>>, vector<1x1x128xf32>
    %18 = vector.shape_cast %17 : vector<1x1x128xf32> to vector<1x128xf32>
    %c0_23 = arith.constant 0 : index
    %c0_24 = arith.constant 0 : index
    %19 = vector.load %arg12[%c0_23, %c0_24] : memref<64x32xf32, #tpu.memory_space<vmem>>, vector<64x32xf32>
    %20 = arith.truncf %19 : vector<64x32xf32> to vector<64x32xbf16>
    %cst_25 = arith.constant dense<0.000000e+00> : vector<64x128xf32>
    %21 = tpu.matmul %20, %14, %cst_25 {dimension_numbers = #tpu.dot_dimension_numbers<[1], [0], [0], [1], [0, 0, 1, 1], [], []>} : vector<64x32xbf16>, vector<32x128xbf16>, vector<64x128xf32> -> vector<64x128xf32>
    %22 = vector.broadcast %18 : vector<1x128xf32> to vector<64x128xf32>
    %23 = arith.addf %21, %22 : vector<64x128xf32>
    %c0_26 = arith.constant 0 : index
    %c0_27 = arith.constant 0 : index
    %24 = vector.load %arg13[%c0_26, %c0_27] : memref<64x128xf32, #tpu.memory_space<vmem>>, vector<64x128xf32>
    tpu.vector_store %arg13[%c0_26, %c0_27], %23 {strides = array<i32>} : memref<64x128xf32, #tpu.memory_space<vmem>>, vector<64x128xf32>,
    %cst_28 = arith.constant 0.000000e+00 : f32
    %25 = vector.broadcast %cst_28 : f32 to vector<8x32xf32>
    %c0_i32 = arith.constant 0 : i32
    %c8_i32 = arith.constant 8 : i32
    %26 = arith.muli %c0_i32, %c8_i32 : i32
    %27 = tpu.assume_multiple %26, 8 : i32
    %28 = arith.index_cast %27 : i32 to index
    %c0_29 = arith.constant 0 : index
    %29 = vector.load %arg13[%28, %c0_29] : memref<64x128xf32, #tpu.memory_space<vmem>>, vector<8x128xf32>
    %30 = arith.truncf %25 : vector<8x32xf32> to vector<8x32xbf16>
    %cst_30 = arith.constant dense<0.000000e+00> : vector<8x128xf32>
    %31 = tpu.matmul %30, %16, %cst_30 {dimension_numbers = #tpu.dot_dimension_numbers<[1], [0], [0], [1], [0, 0, 1, 1], [], []>} : vector<8x32xbf16>, vector<32x128xbf16>, vector<8x128xf32> -> vector<8x128xf32>
    %32 = arith.addf %29, %31 : vector<8x128xf32>
    %33 = arith.negf %32 : vector<8x128xf32>
    %34 = math.exp %33 : vector<8x128xf32>
    %cst_31 = arith.constant 1.000000e+00 : f32
    %35 = vector.broadcast %cst_31 : f32 to vector<8x128xf32>
    %36 = arith.addf %35, %34 : vector<8x128xf32>
    %37 = arith.divf %35, %36 : vector<8x128xf32>
    %38 = math.tanh %32 : vector<8x128xf32>
    %39 = vector.extract_strided_slice %37 {offsets = [0, 0], sizes = [8, 32], strides = [1, 1]} : vector<8x128xf32> to vector<8x32xf32>
    %40 = vector.extract_strided_slice %37 {offsets = [0, 32], sizes = [8, 32], strides = [1, 1]} : vector<8x128xf32> to vector<8x32xf32>
    %41 = vector.extract_strided_slice %38 {offsets = [0, 64], sizes = [8, 32], strides = [1, 1]} : vector<8x128xf32> to vector<8x32xf32>
    %42 = vector.extract_strided_slice %37 {offsets = [0, 96], sizes = [8, 32], strides = [1, 1]} : vector<8x128xf32> to vector<8x32xf32>
    %43 = arith.mulf %40, %25 : vector<8x32xf32>
    %44 = arith.mulf %39, %41 : vector<8x32xf32>
    %45 = arith.addf %43, %44 : vector<8x32xf32>
    %46 = math.tanh %45 : vector<8x32xf32>
    %47 = arith.mulf %42, %46 : vector<8x32xf32>
    %48 = arith.index_cast %27 : i32 to index
    %c0_32 = arith.constant 0 : index
    %49 = vector.load %arg12[%48, %c0_32] : memref<64x32xf32, #tpu.memory_space<vmem>>, vector<8x32xf32>
    tpu.vector_store %arg12[%48, %c0_32], %47 {strides = array<i32>} : memref<64x32xf32, #tpu.memory_space<vmem>>, vector<8x32xf32>,
    %c1_i32 = arith.constant 1 : i32
    %c8_i32_33 = arith.constant 8 : i32
    %50 = arith.muli %c1_i32, %c8_i32_33 : i32
    %51 = tpu.assume_multiple %50, 8 : i32
    %52 = arith.index_cast %51 : i32 to index
    %c0_34 = arith.constant 0 : index
    %53 = vector.load %arg13[%52, %c0_34] : memref<64x128xf32, #tpu.memory_space<vmem>>, vector<8x128xf32>
    %54 = arith.truncf %47 : vector<8x32xf32> to vector<8x32xbf16>
    %cst_35 = arith.constant dense<0.000000e+00> : vector<8x128xf32>
    %55 = tpu.matmul %54, %16, %cst_35 {dimension_numbers = #tpu.dot_dimension_numbers<[1], [0], [0], [1], [0, 0, 1, 1], [], []>} : vector<8x32xbf16>, vector<32x128xbf16>, vector<8x128xf32> -> vector<8x128xf32>
    %56 = arith.addf %53, %55 : vector<8x128xf32>
    %57 = arith.negf %56 : vector<8x128xf32>
    %58 = math.exp %57 : vector<8x128xf32>
    %cst_36 = arith.constant 1.000000e+00 : f32
    %59 = vector.broadcast %cst_36 : f32 to vector<8x128xf32>
    %60 = arith.addf %59, %58 : vector<8x128xf32>
    %61 = arith.divf %59, %60 : vector<8x128xf32>
    %62 = math.tanh %56 : vector<8x128xf32>
    %63 = vector.extract_strided_slice %61 {offsets = [0, 0], sizes = [8, 32], strides = [1, 1]} : vector<8x128xf32> to vector<8x32xf32>
    %64 = vector.extract_strided_slice %61 {offsets = [0, 32], sizes = [8, 32], strides = [1, 1]} : vector<8x128xf32> to vector<8x32xf32>
    %65 = vector.extract_strided_slice %62 {offsets = [0, 64], sizes = [8, 32], strides = [1, 1]} : vector<8x128xf32> to vector<8x32xf32>
    %66 = vector.extract_strided_slice %61 {offsets = [0, 96], sizes = [8, 32], strides = [1, 1]} : vector<8x128xf32> to vector<8x32xf32>
    %67 = arith.mulf %64, %45 : vector<8x32xf32>
    %68 = arith.mulf %63, %65 : vector<8x32xf32>
    %69 = arith.addf %67, %68 : vector<8x32xf32>
    %70 = math.tanh %69 : vector<8x32xf32>
    %71 = arith.mulf %66, %70 : vector<8x32xf32>
    %72 = arith.index_cast %51 : i32 to index
    %c0_37 = arith.constant 0 : index
    %73 = vector.load %arg12[%72, %c0_37] : memref<64x32xf32, #tpu.memory_space<vmem>>, vector<8x32xf32>
    tpu.vector_store %arg12[%72, %c0_37], %71 {strides = array<i32>} : memref<64x32xf32, #tpu.memory_space<vmem>>, vector<8x32xf32>,
    %c2_i32 = arith.constant 2 : i32
    %c8_i32_38 = arith.constant 8 : i32
    %74 = arith.muli %c2_i32, %c8_i32_38 : i32
    %75 = tpu.assume_multiple %74, 8 : i32
    %76 = arith.index_cast %75 : i32 to index
    %c0_39 = arith.constant 0 : index
    %77 = vector.load %arg13[%76, %c0_39] : memref<64x128xf32, #tpu.memory_space<vmem>>, vector<8x128xf32>
    %78 = arith.truncf %71 : vector<8x32xf32> to vector<8x32xbf16>
    %cst_40 = arith.constant dense<0.000000e+00> : vector<8x128xf32>
    %79 = tpu.matmul %78, %16, %cst_40 {dimension_numbers = #tpu.dot_dimension_numbers<[1], [0], [0], [1], [0, 0, 1, 1], [], []>} : vector<8x32xbf16>, vector<32x128xbf16>, vector<8x128xf32> -> vector<8x128xf32>
    %80 = arith.addf %77, %79 : vector<8x128xf32>
    %81 = arith.negf %80 : vector<8x128xf32>
    %82 = math.exp %81 : vector<8x128xf32>
    %cst_41 = arith.constant 1.000000e+00 : f32
    %83 = vector.broadcast %cst_41 : f32 to vector<8x128xf32>
    %84 = arith.addf %83, %82 : vector<8x128xf32>
    %85 = arith.divf %83, %84 : vector<8x128xf32>
    %86 = math.tanh %80 : vector<8x128xf32>
    %87 = vector.extract_strided_slice %85 {offsets = [0, 0], sizes = [8, 32], strides = [1, 1]} : vector<8x128xf32> to vector<8x32xf32>
    %88 = vector.extract_strided_slice %85 {offsets = [0, 32], sizes = [8, 32], strides = [1, 1]} : vector<8x128xf32> to vector<8x32xf32>
    %89 = vector.extract_strided_slice %86 {offsets = [0, 64], sizes = [8, 32], strides = [1, 1]} : vector<8x128xf32> to vector<8x32xf32>
    %90 = vector.extract_strided_slice %85 {offsets = [0, 96], sizes = [8, 32], strides = [1, 1]} : vector<8x128xf32> to vector<8x32xf32>
    %91 = arith.mulf %88, %69 : vector<8x32xf32>
    %92 = arith.mulf %87, %89 : vector<8x32xf32>
    %93 = arith.addf %91, %92 : vector<8x32xf32>
    %94 = math.tanh %93 : vector<8x32xf32>
    %95 = arith.mulf %90, %94 : vector<8x32xf32>
    %96 = arith.index_cast %75 : i32 to index
    %c0_42 = arith.constant 0 : index
    %97 = vector.load %arg12[%96, %c0_42] : memref<64x32xf32, #tpu.memory_space<vmem>>, vector<8x32xf32>
    tpu.vector_store %arg12[%96, %c0_42], %95 {strides = array<i32>} : memref<64x32xf32, #tpu.memory_space<vmem>>, vector<8x32xf32>,
    %c3_i32 = arith.constant 3 : i32
    %c8_i32_43 = arith.constant 8 : i32
    %98 = arith.muli %c3_i32, %c8_i32_43 : i32
    %99 = tpu.assume_multiple %98, 8 : i32
    %100 = arith.index_cast %99 : i32 to index
    %c0_44 = arith.constant 0 : index
    %101 = vector.load %arg13[%100, %c0_44] : memref<64x128xf32, #tpu.memory_space<vmem>>, vector<8x128xf32>
    %102 = arith.truncf %95 : vector<8x32xf32> to vector<8x32xbf16>
    %cst_45 = arith.constant dense<0.000000e+00> : vector<8x128xf32>
    %103 = tpu.matmul %102, %16, %cst_45 {dimension_numbers = #tpu.dot_dimension_numbers<[1], [0], [0], [1], [0, 0, 1, 1], [], []>} : vector<8x32xbf16>, vector<32x128xbf16>, vector<8x128xf32> -> vector<8x128xf32>
    %104 = arith.addf %101, %103 : vector<8x128xf32>
    %105 = arith.negf %104 : vector<8x128xf32>
    %106 = math.exp %105 : vector<8x128xf32>
    %cst_46 = arith.constant 1.000000e+00 : f32
    %107 = vector.broadcast %cst_46 : f32 to vector<8x128xf32>
    %108 = arith.addf %107, %106 : vector<8x128xf32>
    %109 = arith.divf %107, %108 : vector<8x128xf32>
    %110 = math.tanh %104 : vector<8x128xf32>
    %111 = vector.extract_strided_slice %109 {offsets = [0, 0], sizes = [8, 32], strides = [1, 1]} : vector<8x128xf32> to vector<8x32xf32>
    %112 = vector.extract_strided_slice %109 {offsets = [0, 32], sizes = [8, 32], strides = [1, 1]} : vector<8x128xf32> to vector<8x32xf32>
    %113 = vector.extract_strided_slice %110 {offsets = [0, 64], sizes = [8, 32], strides = [1, 1]} : vector<8x128xf32> to vector<8x32xf32>
    %114 = vector.extract_strided_slice %109 {offsets = [0, 96], sizes = [8, 32], strides = [1, 1]} : vector<8x128xf32> to vector<8x32xf32>
    %115 = arith.mulf %112, %93 : vector<8x32xf32>
    %116 = arith.mulf %111, %113 : vector<8x32xf32>
    %117 = arith.addf %115, %116 : vector<8x32xf32>
    %118 = math.tanh %117 : vector<8x32xf32>
    %119 = arith.mulf %114, %118 : vector<8x32xf32>
    %120 = arith.index_cast %99 : i32 to index
    %c0_47 = arith.constant 0 : index
    %121 = vector.load %arg12[%120, %c0_47] : memref<64x32xf32, #tpu.memory_space<vmem>>, vector<8x32xf32>
    tpu.vector_store %arg12[%120, %c0_47], %119 {strides = array<i32>} : memref<64x32xf32, #tpu.memory_space<vmem>>, vector<8x32xf32>,
    %c4_i32 = arith.constant 4 : i32
    %c8_i32_48 = arith.constant 8 : i32
    %122 = arith.muli %c4_i32, %c8_i32_48 : i32
    %123 = tpu.assume_multiple %122, 8 : i32
    %124 = arith.index_cast %123 : i32 to index
    %c0_49 = arith.constant 0 : index
    %125 = vector.load %arg13[%124, %c0_49] : memref<64x128xf32, #tpu.memory_space<vmem>>, vector<8x128xf32>
    %126 = arith.truncf %119 : vector<8x32xf32> to vector<8x32xbf16>
    %cst_50 = arith.constant dense<0.000000e+00> : vector<8x128xf32>
    %127 = tpu.matmul %126, %16, %cst_50 {dimension_numbers = #tpu.dot_dimension_numbers<[1], [0], [0], [1], [0, 0, 1, 1], [], []>} : vector<8x32xbf16>, vector<32x128xbf16>, vector<8x128xf32> -> vector<8x128xf32>
    %128 = arith.addf %125, %127 : vector<8x128xf32>
    %129 = arith.negf %128 : vector<8x128xf32>
    %130 = math.exp %129 : vector<8x128xf32>
    %cst_51 = arith.constant 1.000000e+00 : f32
    %131 = vector.broadcast %cst_51 : f32 to vector<8x128xf32>
    %132 = arith.addf %131, %130 : vector<8x128xf32>
    %133 = arith.divf %131, %132 : vector<8x128xf32>
    %134 = math.tanh %128 : vector<8x128xf32>
    %135 = vector.extract_strided_slice %133 {offsets = [0, 0], sizes = [8, 32], strides = [1, 1]} : vector<8x128xf32> to vector<8x32xf32>
    %136 = vector.extract_strided_slice %133 {offsets = [0, 32], sizes = [8, 32], strides = [1, 1]} : vector<8x128xf32> to vector<8x32xf32>
    %137 = vector.extract_strided_slice %134 {offsets = [0, 64], sizes = [8, 32], strides = [1, 1]} : vector<8x128xf32> to vector<8x32xf32>
    %138 = vector.extract_strided_slice %133 {offsets = [0, 96], sizes = [8, 32], strides = [1, 1]} : vector<8x128xf32> to vector<8x32xf32>
    %139 = arith.mulf %136, %117 : vector<8x32xf32>
    %140 = arith.mulf %135, %137 : vector<8x32xf32>
    %141 = arith.addf %139, %140 : vector<8x32xf32>
    %142 = math.tanh %141 : vector<8x32xf32>
    %143 = arith.mulf %138, %142 : vector<8x32xf32>
    %144 = arith.index_cast %123 : i32 to index
    %c0_52 = arith.constant 0 : index
    %145 = vector.load %arg12[%144, %c0_52] : memref<64x32xf32, #tpu.memory_space<vmem>>, vector<8x32xf32>
    tpu.vector_store %arg12[%144, %c0_52], %143 {strides = array<i32>} : memref<64x32xf32, #tpu.memory_space<vmem>>, vector<8x32xf32>,
    %c5_i32 = arith.constant 5 : i32
    %c8_i32_53 = arith.constant 8 : i32
    %146 = arith.muli %c5_i32, %c8_i32_53 : i32
    %147 = tpu.assume_multiple %146, 8 : i32
    %148 = arith.index_cast %147 : i32 to index
    %c0_54 = arith.constant 0 : index
    %149 = vector.load %arg13[%148, %c0_54] : memref<64x128xf32, #tpu.memory_space<vmem>>, vector<8x128xf32>
    %150 = arith.truncf %143 : vector<8x32xf32> to vector<8x32xbf16>
    %cst_55 = arith.constant dense<0.000000e+00> : vector<8x128xf32>
    %151 = tpu.matmul %150, %16, %cst_55 {dimension_numbers = #tpu.dot_dimension_numbers<[1], [0], [0], [1], [0, 0, 1, 1], [], []>} : vector<8x32xbf16>, vector<32x128xbf16>, vector<8x128xf32> -> vector<8x128xf32>
    %152 = arith.addf %149, %151 : vector<8x128xf32>
    %153 = arith.negf %152 : vector<8x128xf32>
    %154 = math.exp %153 : vector<8x128xf32>
    %cst_56 = arith.constant 1.000000e+00 : f32
    %155 = vector.broadcast %cst_56 : f32 to vector<8x128xf32>
    %156 = arith.addf %155, %154 : vector<8x128xf32>
    %157 = arith.divf %155, %156 : vector<8x128xf32>
    %158 = math.tanh %152 : vector<8x128xf32>
    %159 = vector.extract_strided_slice %157 {offsets = [0, 0], sizes = [8, 32], strides = [1, 1]} : vector<8x128xf32> to vector<8x32xf32>
    %160 = vector.extract_strided_slice %157 {offsets = [0, 32], sizes = [8, 32], strides = [1, 1]} : vector<8x128xf32> to vector<8x32xf32>
    %161 = vector.extract_strided_slice %158 {offsets = [0, 64], sizes = [8, 32], strides = [1, 1]} : vector<8x128xf32> to vector<8x32xf32>
    %162 = vector.extract_strided_slice %157 {offsets = [0, 96], sizes = [8, 32], strides = [1, 1]} : vector<8x128xf32> to vector<8x32xf32>
    %163 = arith.mulf %160, %141 : vector<8x32xf32>
    %164 = arith.mulf %159, %161 : vector<8x32xf32>
    %165 = arith.addf %163, %164 : vector<8x32xf32>
    %166 = math.tanh %165 : vector<8x32xf32>
    %167 = arith.mulf %162, %166 : vector<8x32xf32>
    %168 = arith.index_cast %147 : i32 to index
    %c0_57 = arith.constant 0 : index
    %169 = vector.load %arg12[%168, %c0_57] : memref<64x32xf32, #tpu.memory_space<vmem>>, vector<8x32xf32>
    tpu.vector_store %arg12[%168, %c0_57], %167 {strides = array<i32>} : memref<64x32xf32, #tpu.memory_space<vmem>>, vector<8x32xf32>,
    %c6_i32 = arith.constant 6 : i32
    %c8_i32_58 = arith.constant 8 : i32
    %170 = arith.muli %c6_i32, %c8_i32_58 : i32
    %171 = tpu.assume_multiple %170, 8 : i32
    %172 = arith.index_cast %171 : i32 to index
    %c0_59 = arith.constant 0 : index
    %173 = vector.load %arg13[%172, %c0_59] : memref<64x128xf32, #tpu.memory_space<vmem>>, vector<8x128xf32>
    %174 = arith.truncf %167 : vector<8x32xf32> to vector<8x32xbf16>
    %cst_60 = arith.constant dense<0.000000e+00> : vector<8x128xf32>
    %175 = tpu.matmul %174, %16, %cst_60 {dimension_numbers = #tpu.dot_dimension_numbers<[1], [0], [0], [1], [0, 0, 1, 1], [], []>} : vector<8x32xbf16>, vector<32x128xbf16>, vector<8x128xf32> -> vector<8x128xf32>
    %176 = arith.addf %173, %175 : vector<8x128xf32>
    %177 = arith.negf %176 : vector<8x128xf32>
    %178 = math.exp %177 : vector<8x128xf32>
    %cst_61 = arith.constant 1.000000e+00 : f32
    %179 = vector.broadcast %cst_61 : f32 to vector<8x128xf32>
    %180 = arith.addf %179, %178 : vector<8x128xf32>
    %181 = arith.divf %179, %180 : vector<8x128xf32>
    %182 = math.tanh %176 : vector<8x128xf32>
    %183 = vector.extract_strided_slice %181 {offsets = [0, 0], sizes = [8, 32], strides = [1, 1]} : vector<8x128xf32> to vector<8x32xf32>
    %184 = vector.extract_strided_slice %181 {offsets = [0, 32], sizes = [8, 32], strides = [1, 1]} : vector<8x128xf32> to vector<8x32xf32>
    %185 = vector.extract_strided_slice %182 {offsets = [0, 64], sizes = [8, 32], strides = [1, 1]} : vector<8x128xf32> to vector<8x32xf32>
    %186 = vector.extract_strided_slice %181 {offsets = [0, 96], sizes = [8, 32], strides = [1, 1]} : vector<8x128xf32> to vector<8x32xf32>
    %187 = arith.mulf %184, %165 : vector<8x32xf32>
    %188 = arith.mulf %183, %185 : vector<8x32xf32>
    %189 = arith.addf %187, %188 : vector<8x32xf32>
    %190 = math.tanh %189 : vector<8x32xf32>
    %191 = arith.mulf %186, %190 : vector<8x32xf32>
    %192 = arith.index_cast %171 : i32 to index
    %c0_62 = arith.constant 0 : index
    %193 = vector.load %arg12[%192, %c0_62] : memref<64x32xf32, #tpu.memory_space<vmem>>, vector<8x32xf32>
    tpu.vector_store %arg12[%192, %c0_62], %191 {strides = array<i32>} : memref<64x32xf32, #tpu.memory_space<vmem>>, vector<8x32xf32>,
    %c7_i32 = arith.constant 7 : i32
    %c8_i32_63 = arith.constant 8 : i32
    %194 = arith.muli %c7_i32, %c8_i32_63 : i32
    %195 = tpu.assume_multiple %194, 8 : i32
    %196 = arith.index_cast %195 : i32 to index
    %c0_64 = arith.constant 0 : index
    %197 = vector.load %arg13[%196, %c0_64] : memref<64x128xf32, #tpu.memory_space<vmem>>, vector<8x128xf32>
    %198 = arith.truncf %191 : vector<8x32xf32> to vector<8x32xbf16>
    %cst_65 = arith.constant dense<0.000000e+00> : vector<8x128xf32>
    %199 = tpu.matmul %198, %16, %cst_65 {dimension_numbers = #tpu.dot_dimension_numbers<[1], [0], [0], [1], [0, 0, 1, 1], [], []>} : vector<8x32xbf16>, vector<32x128xbf16>, vector<8x128xf32> -> vector<8x128xf32>
    %200 = arith.addf %197, %199 : vector<8x128xf32>
    %201 = arith.negf %200 : vector<8x128xf32>
    %202 = math.exp %201 : vector<8x128xf32>
    %cst_66 = arith.constant 1.000000e+00 : f32
    %203 = vector.broadcast %cst_66 : f32 to vector<8x128xf32>
    %204 = arith.addf %203, %202 : vector<8x128xf32>
    %205 = arith.divf %203, %204 : vector<8x128xf32>
    %206 = math.tanh %200 : vector<8x128xf32>
    %207 = vector.extract_strided_slice %205 {offsets = [0, 0], sizes = [8, 32], strides = [1, 1]} : vector<8x128xf32> to vector<8x32xf32>
    %208 = vector.extract_strided_slice %205 {offsets = [0, 32], sizes = [8, 32], strides = [1, 1]} : vector<8x128xf32> to vector<8x32xf32>
    %209 = vector.extract_strided_slice %206 {offsets = [0, 64], sizes = [8, 32], strides = [1, 1]} : vector<8x128xf32> to vector<8x32xf32>
    %210 = vector.extract_strided_slice %205 {offsets = [0, 96], sizes = [8, 32], strides = [1, 1]} : vector<8x128xf32> to vector<8x32xf32>
    %211 = arith.mulf %208, %189 : vector<8x32xf32>
    %212 = arith.mulf %207, %209 : vector<8x32xf32>
    %213 = arith.addf %211, %212 : vector<8x32xf32>
    %214 = math.tanh %213 : vector<8x32xf32>
    %215 = arith.mulf %210, %214 : vector<8x32xf32>
    %216 = arith.index_cast %195 : i32 to index
    %c0_67 = arith.constant 0 : index
    %217 = vector.load %arg12[%216, %c0_67] : memref<64x32xf32, #tpu.memory_space<vmem>>, vector<8x32xf32>
    tpu.vector_store %arg12[%216, %c0_67], %215 {strides = array<i32>} : memref<64x32xf32, #tpu.memory_space<vmem>>, vector<8x32xf32>,
    %c8_i32_68 = arith.constant 8 : i32
    %c1 = arith.constant 1 : index
    %c0_69 = arith.constant 0 : index
    %c0_70 = arith.constant 0 : index
    %218 = vector.load %arg6[%c1, %c0_69, %c0_70] : memref<2x32x128xbf16, #tpu.memory_space<vmem>>, vector<1x32x128xbf16>
    %219 = vector.shape_cast %218 : vector<1x32x128xbf16> to vector<32x128xbf16>
    %c1_71 = arith.constant 1 : index
    %c0_72 = arith.constant 0 : index
    %c0_73 = arith.constant 0 : index
    %220 = vector.load %arg7[%c1_71, %c0_72, %c0_73] : memref<2x32x128xbf16, #tpu.memory_space<vmem>>, vector<1x32x128xbf16>
    %221 = vector.shape_cast %220 : vector<1x32x128xbf16> to vector<32x128xbf16>
    %c1_74 = arith.constant 1 : index
    %c0_75 = arith.constant 0 : index
    %c0_76 = arith.constant 0 : index
    %222 = vector.load %arg8[%c1_74, %c0_75, %c0_76] : memref<2x1x128xf32, #tpu.memory_space<vmem>>, vector<1x1x128xf32>
    %223 = vector.shape_cast %222 : vector<1x1x128xf32> to vector<1x128xf32>
    %c0_77 = arith.constant 0 : index
    %c0_78 = arith.constant 0 : index
    %224 = vector.load %arg12[%c0_77, %c0_78] : memref<64x32xf32, #tpu.memory_space<vmem>>, vector<64x32xf32>
    %225 = arith.truncf %224 : vector<64x32xf32> to vector<64x32xbf16>
    %cst_79 = arith.constant dense<0.000000e+00> : vector<64x128xf32>
    %226 = tpu.matmul %225, %219, %cst_79 {dimension_numbers = #tpu.dot_dimension_numbers<[1], [0], [0], [1], [0, 0, 1, 1], [], []>} : vector<64x32xbf16>, vector<32x128xbf16>, vector<64x128xf32> -> vector<64x128xf32>
    %227 = vector.broadcast %223 : vector<1x128xf32> to vector<64x128xf32>
    %228 = arith.addf %226, %227 : vector<64x128xf32>
    %c0_80 = arith.constant 0 : index
    %c0_81 = arith.constant 0 : index
    %229 = vector.load %arg13[%c0_80, %c0_81] : memref<64x128xf32, #tpu.memory_space<vmem>>, vector<64x128xf32>
    tpu.vector_store %arg13[%c0_80, %c0_81], %228 {strides = array<i32>} : memref<64x128xf32, #tpu.memory_space<vmem>>, vector<64x128xf32>,
    %cst_82 = arith.constant 0.000000e+00 : f32
    %230 = vector.broadcast %cst_82 : f32 to vector<8x32xf32>
    %c0_i32_83 = arith.constant 0 : i32
    %c8_i32_84 = arith.constant 8 : i32
    %231 = arith.muli %c0_i32_83, %c8_i32_84 : i32
    %232 = tpu.assume_multiple %231, 8 : i32
    %233 = arith.index_cast %232 : i32 to index
    %c0_85 = arith.constant 0 : index
    %234 = vector.load %arg13[%233, %c0_85] : memref<64x128xf32, #tpu.memory_space<vmem>>, vector<8x128xf32>
    %235 = arith.truncf %230 : vector<8x32xf32> to vector<8x32xbf16>
    %cst_86 = arith.constant dense<0.000000e+00> : vector<8x128xf32>
    %236 = tpu.matmul %235, %221, %cst_86 {dimension_numbers = #tpu.dot_dimension_numbers<[1], [0], [0], [1], [0, 0, 1, 1], [], []>} : vector<8x32xbf16>, vector<32x128xbf16>, vector<8x128xf32> -> vector<8x128xf32>
    %237 = arith.addf %234, %236 : vector<8x128xf32>
    %238 = arith.negf %237 : vector<8x128xf32>
    %239 = math.exp %238 : vector<8x128xf32>
    %cst_87 = arith.constant 1.000000e+00 : f32
    %240 = vector.broadcast %cst_87 : f32 to vector<8x128xf32>
    %241 = arith.addf %240, %239 : vector<8x128xf32>
    %242 = arith.divf %240, %241 : vector<8x128xf32>
    %243 = math.tanh %237 : vector<8x128xf32>
    %244 = vector.extract_strided_slice %242 {offsets = [0, 0], sizes = [8, 32], strides = [1, 1]} : vector<8x128xf32> to vector<8x32xf32>
    %245 = vector.extract_strided_slice %242 {offsets = [0, 32], sizes = [8, 32], strides = [1, 1]} : vector<8x128xf32> to vector<8x32xf32>
    %246 = vector.extract_strided_slice %243 {offsets = [0, 64], sizes = [8, 32], strides = [1, 1]} : vector<8x128xf32> to vector<8x32xf32>
    %247 = vector.extract_strided_slice %242 {offsets = [0, 96], sizes = [8, 32], strides = [1, 1]} : vector<8x128xf32> to vector<8x32xf32>
    %248 = arith.mulf %245, %230 : vector<8x32xf32>
    %249 = arith.mulf %244, %246 : vector<8x32xf32>
    %250 = arith.addf %248, %249 : vector<8x32xf32>
    %251 = math.tanh %250 : vector<8x32xf32>
    %252 = arith.mulf %247, %251 : vector<8x32xf32>
    %253 = arith.index_cast %232 : i32 to index
    %c0_88 = arith.constant 0 : index
    %254 = vector.load %arg12[%253, %c0_88] : memref<64x32xf32, #tpu.memory_space<vmem>>, vector<8x32xf32>
    tpu.vector_store %arg12[%253, %c0_88], %252 {strides = array<i32>} : memref<64x32xf32, #tpu.memory_space<vmem>>, vector<8x32xf32>,
    %c1_i32_89 = arith.constant 1 : i32
    %c8_i32_90 = arith.constant 8 : i32
    %255 = arith.muli %c1_i32_89, %c8_i32_90 : i32
    %256 = tpu.assume_multiple %255, 8 : i32
    %257 = arith.index_cast %256 : i32 to index
    %c0_91 = arith.constant 0 : index
    %258 = vector.load %arg13[%257, %c0_91] : memref<64x128xf32, #tpu.memory_space<vmem>>, vector<8x128xf32>
    %259 = arith.truncf %252 : vector<8x32xf32> to vector<8x32xbf16>
    %cst_92 = arith.constant dense<0.000000e+00> : vector<8x128xf32>
    %260 = tpu.matmul %259, %221, %cst_92 {dimension_numbers = #tpu.dot_dimension_numbers<[1], [0], [0], [1], [0, 0, 1, 1], [], []>} : vector<8x32xbf16>, vector<32x128xbf16>, vector<8x128xf32> -> vector<8x128xf32>
    %261 = arith.addf %258, %260 : vector<8x128xf32>
    %262 = arith.negf %261 : vector<8x128xf32>
    %263 = math.exp %262 : vector<8x128xf32>
    %cst_93 = arith.constant 1.000000e+00 : f32
    %264 = vector.broadcast %cst_93 : f32 to vector<8x128xf32>
    %265 = arith.addf %264, %263 : vector<8x128xf32>
    %266 = arith.divf %264, %265 : vector<8x128xf32>
    %267 = math.tanh %261 : vector<8x128xf32>
    %268 = vector.extract_strided_slice %266 {offsets = [0, 0], sizes = [8, 32], strides = [1, 1]} : vector<8x128xf32> to vector<8x32xf32>
    %269 = vector.extract_strided_slice %266 {offsets = [0, 32], sizes = [8, 32], strides = [1, 1]} : vector<8x128xf32> to vector<8x32xf32>
    %270 = vector.extract_strided_slice %267 {offsets = [0, 64], sizes = [8, 32], strides = [1, 1]} : vector<8x128xf32> to vector<8x32xf32>
    %271 = vector.extract_strided_slice %266 {offsets = [0, 96], sizes = [8, 32], strides = [1, 1]} : vector<8x128xf32> to vector<8x32xf32>
    %272 = arith.mulf %269, %250 : vector<8x32xf32>
    %273 = arith.mulf %268, %270 : vector<8x32xf32>
    %274 = arith.addf %272, %273 : vector<8x32xf32>
    %275 = math.tanh %274 : vector<8x32xf32>
    %276 = arith.mulf %271, %275 : vector<8x32xf32>
    %277 = arith.index_cast %256 : i32 to index
    %c0_94 = arith.constant 0 : index
    %278 = vector.load %arg12[%277, %c0_94] : memref<64x32xf32, #tpu.memory_space<vmem>>, vector<8x32xf32>
    tpu.vector_store %arg12[%277, %c0_94], %276 {strides = array<i32>} : memref<64x32xf32, #tpu.memory_space<vmem>>, vector<8x32xf32>,
    %c2_i32_95 = arith.constant 2 : i32
    %c8_i32_96 = arith.constant 8 : i32
    %279 = arith.muli %c2_i32_95, %c8_i32_96 : i32
    %280 = tpu.assume_multiple %279, 8 : i32
    %281 = arith.index_cast %280 : i32 to index
    %c0_97 = arith.constant 0 : index
    %282 = vector.load %arg13[%281, %c0_97] : memref<64x128xf32, #tpu.memory_space<vmem>>, vector<8x128xf32>
    %283 = arith.truncf %276 : vector<8x32xf32> to vector<8x32xbf16>
    %cst_98 = arith.constant dense<0.000000e+00> : vector<8x128xf32>
    %284 = tpu.matmul %283, %221, %cst_98 {dimension_numbers = #tpu.dot_dimension_numbers<[1], [0], [0], [1], [0, 0, 1, 1], [], []>} : vector<8x32xbf16>, vector<32x128xbf16>, vector<8x128xf32> -> vector<8x128xf32>
    %285 = arith.addf %282, %284 : vector<8x128xf32>
    %286 = arith.negf %285 : vector<8x128xf32>
    %287 = math.exp %286 : vector<8x128xf32>
    %cst_99 = arith.constant 1.000000e+00 : f32
    %288 = vector.broadcast %cst_99 : f32 to vector<8x128xf32>
    %289 = arith.addf %288, %287 : vector<8x128xf32>
    %290 = arith.divf %288, %289 : vector<8x128xf32>
    %291 = math.tanh %285 : vector<8x128xf32>
    %292 = vector.extract_strided_slice %290 {offsets = [0, 0], sizes = [8, 32], strides = [1, 1]} : vector<8x128xf32> to vector<8x32xf32>
    %293 = vector.extract_strided_slice %290 {offsets = [0, 32], sizes = [8, 32], strides = [1, 1]} : vector<8x128xf32> to vector<8x32xf32>
    %294 = vector.extract_strided_slice %291 {offsets = [0, 64], sizes = [8, 32], strides = [1, 1]} : vector<8x128xf32> to vector<8x32xf32>
    %295 = vector.extract_strided_slice %290 {offsets = [0, 96], sizes = [8, 32], strides = [1, 1]} : vector<8x128xf32> to vector<8x32xf32>
    %296 = arith.mulf %293, %274 : vector<8x32xf32>
    %297 = arith.mulf %292, %294 : vector<8x32xf32>
    %298 = arith.addf %296, %297 : vector<8x32xf32>
    %299 = math.tanh %298 : vector<8x32xf32>
    %300 = arith.mulf %295, %299 : vector<8x32xf32>
    %301 = arith.index_cast %280 : i32 to index
    %c0_100 = arith.constant 0 : index
    %302 = vector.load %arg12[%301, %c0_100] : memref<64x32xf32, #tpu.memory_space<vmem>>, vector<8x32xf32>
    tpu.vector_store %arg12[%301, %c0_100], %300 {strides = array<i32>} : memref<64x32xf32, #tpu.memory_space<vmem>>, vector<8x32xf32>,
    %c3_i32_101 = arith.constant 3 : i32
    %c8_i32_102 = arith.constant 8 : i32
    %303 = arith.muli %c3_i32_101, %c8_i32_102 : i32
    %304 = tpu.assume_multiple %303, 8 : i32
    %305 = arith.index_cast %304 : i32 to index
    %c0_103 = arith.constant 0 : index
    %306 = vector.load %arg13[%305, %c0_103] : memref<64x128xf32, #tpu.memory_space<vmem>>, vector<8x128xf32>
    %307 = arith.truncf %300 : vector<8x32xf32> to vector<8x32xbf16>
    %cst_104 = arith.constant dense<0.000000e+00> : vector<8x128xf32>
    %308 = tpu.matmul %307, %221, %cst_104 {dimension_numbers = #tpu.dot_dimension_numbers<[1], [0], [0], [1], [0, 0, 1, 1], [], []>} : vector<8x32xbf16>, vector<32x128xbf16>, vector<8x128xf32> -> vector<8x128xf32>
    %309 = arith.addf %306, %308 : vector<8x128xf32>
    %310 = arith.negf %309 : vector<8x128xf32>
    %311 = math.exp %310 : vector<8x128xf32>
    %cst_105 = arith.constant 1.000000e+00 : f32
    %312 = vector.broadcast %cst_105 : f32 to vector<8x128xf32>
    %313 = arith.addf %312, %311 : vector<8x128xf32>
    %314 = arith.divf %312, %313 : vector<8x128xf32>
    %315 = math.tanh %309 : vector<8x128xf32>
    %316 = vector.extract_strided_slice %314 {offsets = [0, 0], sizes = [8, 32], strides = [1, 1]} : vector<8x128xf32> to vector<8x32xf32>
    %317 = vector.extract_strided_slice %314 {offsets = [0, 32], sizes = [8, 32], strides = [1, 1]} : vector<8x128xf32> to vector<8x32xf32>
    %318 = vector.extract_strided_slice %315 {offsets = [0, 64], sizes = [8, 32], strides = [1, 1]} : vector<8x128xf32> to vector<8x32xf32>
    %319 = vector.extract_strided_slice %314 {offsets = [0, 96], sizes = [8, 32], strides = [1, 1]} : vector<8x128xf32> to vector<8x32xf32>
    %320 = arith.mulf %317, %298 : vector<8x32xf32>
    %321 = arith.mulf %316, %318 : vector<8x32xf32>
    %322 = arith.addf %320, %321 : vector<8x32xf32>
    %323 = math.tanh %322 : vector<8x32xf32>
    %324 = arith.mulf %319, %323 : vector<8x32xf32>
    %325 = arith.index_cast %304 : i32 to index
    %c0_106 = arith.constant 0 : index
    %326 = vector.load %arg12[%325, %c0_106] : memref<64x32xf32, #tpu.memory_space<vmem>>, vector<8x32xf32>
    tpu.vector_store %arg12[%325, %c0_106], %324 {strides = array<i32>} : memref<64x32xf32, #tpu.memory_space<vmem>>, vector<8x32xf32>,
    %c4_i32_107 = arith.constant 4 : i32
    %c8_i32_108 = arith.constant 8 : i32
    %327 = arith.muli %c4_i32_107, %c8_i32_108 : i32
    %328 = tpu.assume_multiple %327, 8 : i32
    %329 = arith.index_cast %328 : i32 to index
    %c0_109 = arith.constant 0 : index
    %330 = vector.load %arg13[%329, %c0_109] : memref<64x128xf32, #tpu.memory_space<vmem>>, vector<8x128xf32>
    %331 = arith.truncf %324 : vector<8x32xf32> to vector<8x32xbf16>
    %cst_110 = arith.constant dense<0.000000e+00> : vector<8x128xf32>
    %332 = tpu.matmul %331, %221, %cst_110 {dimension_numbers = #tpu.dot_dimension_numbers<[1], [0], [0], [1], [0, 0, 1, 1], [], []>} : vector<8x32xbf16>, vector<32x128xbf16>, vector<8x128xf32> -> vector<8x128xf32>
    %333 = arith.addf %330, %332 : vector<8x128xf32>
    %334 = arith.negf %333 : vector<8x128xf32>
    %335 = math.exp %334 : vector<8x128xf32>
    %cst_111 = arith.constant 1.000000e+00 : f32
    %336 = vector.broadcast %cst_111 : f32 to vector<8x128xf32>
    %337 = arith.addf %336, %335 : vector<8x128xf32>
    %338 = arith.divf %336, %337 : vector<8x128xf32>
    %339 = math.tanh %333 : vector<8x128xf32>
    %340 = vector.extract_strided_slice %338 {offsets = [0, 0], sizes = [8, 32], strides = [1, 1]} : vector<8x128xf32> to vector<8x32xf32>
    %341 = vector.extract_strided_slice %338 {offsets = [0, 32], sizes = [8, 32], strides = [1, 1]} : vector<8x128xf32> to vector<8x32xf32>
    %342 = vector.extract_strided_slice %339 {offsets = [0, 64], sizes = [8, 32], strides = [1, 1]} : vector<8x128xf32> to vector<8x32xf32>
    %343 = vector.extract_strided_slice %338 {offsets = [0, 96], sizes = [8, 32], strides = [1, 1]} : vector<8x128xf32> to vector<8x32xf32>
    %344 = arith.mulf %341, %322 : vector<8x32xf32>
    %345 = arith.mulf %340, %342 : vector<8x32xf32>
    %346 = arith.addf %344, %345 : vector<8x32xf32>
    %347 = math.tanh %346 : vector<8x32xf32>
    %348 = arith.mulf %343, %347 : vector<8x32xf32>
    %349 = arith.index_cast %328 : i32 to index
    %c0_112 = arith.constant 0 : index
    %350 = vector.load %arg12[%349, %c0_112] : memref<64x32xf32, #tpu.memory_space<vmem>>, vector<8x32xf32>
    tpu.vector_store %arg12[%349, %c0_112], %348 {strides = array<i32>} : memref<64x32xf32, #tpu.memory_space<vmem>>, vector<8x32xf32>,
    %c5_i32_113 = arith.constant 5 : i32
    %c8_i32_114 = arith.constant 8 : i32
    %351 = arith.muli %c5_i32_113, %c8_i32_114 : i32
    %352 = tpu.assume_multiple %351, 8 : i32
    %353 = arith.index_cast %352 : i32 to index
    %c0_115 = arith.constant 0 : index
    %354 = vector.load %arg13[%353, %c0_115] : memref<64x128xf32, #tpu.memory_space<vmem>>, vector<8x128xf32>
    %355 = arith.truncf %348 : vector<8x32xf32> to vector<8x32xbf16>
    %cst_116 = arith.constant dense<0.000000e+00> : vector<8x128xf32>
    %356 = tpu.matmul %355, %221, %cst_116 {dimension_numbers = #tpu.dot_dimension_numbers<[1], [0], [0], [1], [0, 0, 1, 1], [], []>} : vector<8x32xbf16>, vector<32x128xbf16>, vector<8x128xf32> -> vector<8x128xf32>
    %357 = arith.addf %354, %356 : vector<8x128xf32>
    %358 = arith.negf %357 : vector<8x128xf32>
    %359 = math.exp %358 : vector<8x128xf32>
    %cst_117 = arith.constant 1.000000e+00 : f32
    %360 = vector.broadcast %cst_117 : f32 to vector<8x128xf32>
    %361 = arith.addf %360, %359 : vector<8x128xf32>
    %362 = arith.divf %360, %361 : vector<8x128xf32>
    %363 = math.tanh %357 : vector<8x128xf32>
    %364 = vector.extract_strided_slice %362 {offsets = [0, 0], sizes = [8, 32], strides = [1, 1]} : vector<8x128xf32> to vector<8x32xf32>
    %365 = vector.extract_strided_slice %362 {offsets = [0, 32], sizes = [8, 32], strides = [1, 1]} : vector<8x128xf32> to vector<8x32xf32>
    %366 = vector.extract_strided_slice %363 {offsets = [0, 64], sizes = [8, 32], strides = [1, 1]} : vector<8x128xf32> to vector<8x32xf32>
    %367 = vector.extract_strided_slice %362 {offsets = [0, 96], sizes = [8, 32], strides = [1, 1]} : vector<8x128xf32> to vector<8x32xf32>
    %368 = arith.mulf %365, %346 : vector<8x32xf32>
    %369 = arith.mulf %364, %366 : vector<8x32xf32>
    %370 = arith.addf %368, %369 : vector<8x32xf32>
    %371 = math.tanh %370 : vector<8x32xf32>
    %372 = arith.mulf %367, %371 : vector<8x32xf32>
    %373 = arith.index_cast %352 : i32 to index
    %c0_118 = arith.constant 0 : index
    %374 = vector.load %arg12[%373, %c0_118] : memref<64x32xf32, #tpu.memory_space<vmem>>, vector<8x32xf32>
    tpu.vector_store %arg12[%373, %c0_118], %372 {strides = array<i32>} : memref<64x32xf32, #tpu.memory_space<vmem>>, vector<8x32xf32>,
    %c6_i32_119 = arith.constant 6 : i32
    %c8_i32_120 = arith.constant 8 : i32
    %375 = arith.muli %c6_i32_119, %c8_i32_120 : i32
    %376 = tpu.assume_multiple %375, 8 : i32
    %377 = arith.index_cast %376 : i32 to index
    %c0_121 = arith.constant 0 : index
    %378 = vector.load %arg13[%377, %c0_121] : memref<64x128xf32, #tpu.memory_space<vmem>>, vector<8x128xf32>
    %379 = arith.truncf %372 : vector<8x32xf32> to vector<8x32xbf16>
    %cst_122 = arith.constant dense<0.000000e+00> : vector<8x128xf32>
    %380 = tpu.matmul %379, %221, %cst_122 {dimension_numbers = #tpu.dot_dimension_numbers<[1], [0], [0], [1], [0, 0, 1, 1], [], []>} : vector<8x32xbf16>, vector<32x128xbf16>, vector<8x128xf32> -> vector<8x128xf32>
    %381 = arith.addf %378, %380 : vector<8x128xf32>
    %382 = arith.negf %381 : vector<8x128xf32>
    %383 = math.exp %382 : vector<8x128xf32>
    %cst_123 = arith.constant 1.000000e+00 : f32
    %384 = vector.broadcast %cst_123 : f32 to vector<8x128xf32>
    %385 = arith.addf %384, %383 : vector<8x128xf32>
    %386 = arith.divf %384, %385 : vector<8x128xf32>
    %387 = math.tanh %381 : vector<8x128xf32>
    %388 = vector.extract_strided_slice %386 {offsets = [0, 0], sizes = [8, 32], strides = [1, 1]} : vector<8x128xf32> to vector<8x32xf32>
    %389 = vector.extract_strided_slice %386 {offsets = [0, 32], sizes = [8, 32], strides = [1, 1]} : vector<8x128xf32> to vector<8x32xf32>
    %390 = vector.extract_strided_slice %387 {offsets = [0, 64], sizes = [8, 32], strides = [1, 1]} : vector<8x128xf32> to vector<8x32xf32>
    %391 = vector.extract_strided_slice %386 {offsets = [0, 96], sizes = [8, 32], strides = [1, 1]} : vector<8x128xf32> to vector<8x32xf32>
    %392 = arith.mulf %389, %370 : vector<8x32xf32>
    %393 = arith.mulf %388, %390 : vector<8x32xf32>
    %394 = arith.addf %392, %393 : vector<8x32xf32>
    %395 = math.tanh %394 : vector<8x32xf32>
    %396 = arith.mulf %391, %395 : vector<8x32xf32>
    %397 = arith.index_cast %376 : i32 to index
    %c0_124 = arith.constant 0 : index
    %398 = vector.load %arg12[%397, %c0_124] : memref<64x32xf32, #tpu.memory_space<vmem>>, vector<8x32xf32>
    tpu.vector_store %arg12[%397, %c0_124], %396 {strides = array<i32>} : memref<64x32xf32, #tpu.memory_space<vmem>>, vector<8x32xf32>,
    %c7_i32_125 = arith.constant 7 : i32
    %c8_i32_126 = arith.constant 8 : i32
    %399 = arith.muli %c7_i32_125, %c8_i32_126 : i32
    %400 = tpu.assume_multiple %399, 8 : i32
    %401 = arith.index_cast %400 : i32 to index
    %c0_127 = arith.constant 0 : index
    %402 = vector.load %arg13[%401, %c0_127] : memref<64x128xf32, #tpu.memory_space<vmem>>, vector<8x128xf32>
    %403 = arith.truncf %396 : vector<8x32xf32> to vector<8x32xbf16>
    %cst_128 = arith.constant dense<0.000000e+00> : vector<8x128xf32>
    %404 = tpu.matmul %403, %221, %cst_128 {dimension_numbers = #tpu.dot_dimension_numbers<[1], [0], [0], [1], [0, 0, 1, 1], [], []>} : vector<8x32xbf16>, vector<32x128xbf16>, vector<8x128xf32> -> vector<8x128xf32>
    %405 = arith.addf %402, %404 : vector<8x128xf32>
    %406 = arith.negf %405 : vector<8x128xf32>
    %407 = math.exp %406 : vector<8x128xf32>
    %cst_129 = arith.constant 1.000000e+00 : f32
    %408 = vector.broadcast %cst_129 : f32 to vector<8x128xf32>
    %409 = arith.addf %408, %407 : vector<8x128xf32>
    %410 = arith.divf %408, %409 : vector<8x128xf32>
    %411 = math.tanh %405 : vector<8x128xf32>
    %412 = vector.extract_strided_slice %410 {offsets = [0, 0], sizes = [8, 32], strides = [1, 1]} : vector<8x128xf32> to vector<8x32xf32>
    %413 = vector.extract_strided_slice %410 {offsets = [0, 32], sizes = [8, 32], strides = [1, 1]} : vector<8x128xf32> to vector<8x32xf32>
    %414 = vector.extract_strided_slice %411 {offsets = [0, 64], sizes = [8, 32], strides = [1, 1]} : vector<8x128xf32> to vector<8x32xf32>
    %415 = vector.extract_strided_slice %410 {offsets = [0, 96], sizes = [8, 32], strides = [1, 1]} : vector<8x128xf32> to vector<8x32xf32>
    %416 = arith.mulf %413, %394 : vector<8x32xf32>
    %417 = arith.mulf %412, %414 : vector<8x32xf32>
    %418 = arith.addf %416, %417 : vector<8x32xf32>
    %419 = math.tanh %418 : vector<8x32xf32>
    %420 = arith.mulf %415, %419 : vector<8x32xf32>
    %421 = arith.index_cast %400 : i32 to index
    %c0_130 = arith.constant 0 : index
    %422 = vector.load %arg12[%421, %c0_130] : memref<64x32xf32, #tpu.memory_space<vmem>>, vector<8x32xf32>
    tpu.vector_store %arg12[%421, %c0_130], %420 {strides = array<i32>} : memref<64x32xf32, #tpu.memory_space<vmem>>, vector<8x32xf32>,
    %c8_i32_131 = arith.constant 8 : i32
    %c0_132 = arith.constant 0 : index
    %c0_133 = arith.constant 0 : index
    %423 = vector.load %arg12[%c0_132, %c0_133] : memref<64x32xf32, #tpu.memory_space<vmem>>, vector<64x32xf32>
    %c0_134 = arith.constant 0 : index
    %c0_135 = arith.constant 0 : index
    %424 = vector.load %arg9[%c0_134, %c0_135] : memref<1x32xf32, #tpu.memory_space<vmem>>, vector<1x32xf32>
    %425 = vector.broadcast %424 : vector<1x32xf32> to vector<64x32xf32>
    %426 = arith.mulf %423, %425 : vector<64x32xf32>
    %cst_136 = arith.constant dense<0.000000e+00> : vector<64xf32>
    %427 = vector.multi_reduction <add>, %426, %cst_136 [1] : vector<64x32xf32> to vector<64xf32>
    %428 = vector.shape_cast %427 : vector<64xf32> to vector<64x1xf32>
    %c0_137 = arith.constant 0 : index
    %c0_138 = arith.constant 0 : index
    %429 = vector.load %arg10[%c0_137, %c0_138] : memref<1x1xf32, #tpu.memory_space<vmem>>, vector<1x1xf32>
    %430 = vector.broadcast %429 : vector<1x1xf32> to vector<64x1xf32>
    %431 = arith.addf %428, %430 : vector<64x1xf32>
    %432 = arith.negf %431 : vector<64x1xf32>
    %433 = math.exp %432 : vector<64x1xf32>
    %cst_139 = arith.constant 1.000000e+00 : f32
    %434 = vector.broadcast %cst_139 : f32 to vector<64x1xf32>
    %435 = arith.addf %434, %433 : vector<64x1xf32>
    %436 = arith.divf %434, %435 : vector<64x1xf32>
    %437 = vector.shape_cast %436 : vector<64x1xf32> to vector<8x8xf32>
    %c0_140 = arith.constant 0 : index
    %c0_141 = arith.constant 0 : index
    %c0_142 = arith.constant 0 : index
    %438 = vector.load %arg11[%c0_140, %c0_141, %c0_142] : memref<1x8x8xf32, #tpu.memory_space<vmem>>, vector<1x8x8xf32>
    %439 = vector.shape_cast %438 : vector<1x8x8xf32> to vector<8x8xf32>
    %440 = vector.shape_cast %437 : vector<8x8xf32> to vector<1x8x8xf32>
    tpu.vector_store %arg11[%c0_140, %c0_141, %c0_142], %440 {strides = array<i32>} : memref<1x8x8xf32, #tpu.memory_space<vmem>>, vector<1x8x8xf32>,
    return
  }
  func.func @transform_0(%arg0: i32) -> (i32, i32, i32) {
    %c0_i32 = arith.constant 0 : i32
    %c0_i32_0 = arith.constant 0 : i32
    %c0_i32_1 = arith.constant 0 : i32
    return %arg0, %c0_i32, %c0_i32_0 : i32, i32, i32
  }
  func.func @transform_1(%arg0: i32) -> (i32, i32, i32) {
    %c0_i32 = arith.constant 0 : i32
    %c0_i32_0 = arith.constant 0 : i32
    %c0_i32_1 = arith.constant 0 : i32
    return %arg0, %c0_i32, %c0_i32_0 : i32, i32, i32
  }
  func.func @transform_2(%arg0: i32) -> (i32, i32) {
    %c0_i32 = arith.constant 0 : i32
    %c0_i32_0 = arith.constant 0 : i32
    %c0_i32_1 = arith.constant 0 : i32
    return %c0_i32, %c0_i32_0 : i32, i32
  }
  func.func @transform_3(%arg0: i32) -> (i32, i32) {
    %c0_i32 = arith.constant 0 : i32
    %c0_i32_0 = arith.constant 0 : i32
    %c0_i32_1 = arith.constant 0 : i32
    return %c0_i32, %c0_i32_0 : i32, i32
  }
  func.func @transform_4(%arg0: i32) -> (i32, i32) {
    %c0_i32 = arith.constant 0 : i32
    %c0_i32_0 = arith.constant 0 : i32
    %c0_i32_1 = arith.constant 0 : i32
    return %c0_i32, %c0_i32_0 : i32, i32
  }
  func.func @transform_5(%arg0: i32) -> (i32, i32, i32) {
    %c0_i32 = arith.constant 0 : i32
    %c0_i32_0 = arith.constant 0 : i32
    %c0_i32_1 = arith.constant 0 : i32
    %c0_i32_2 = arith.constant 0 : i32
    return %c0_i32, %c0_i32_0, %c0_i32_1 : i32, i32, i32
  }
  func.func @transform_6(%arg0: i32) -> (i32, i32, i32) {
    %c0_i32 = arith.constant 0 : i32
    %c0_i32_0 = arith.constant 0 : i32
    %c0_i32_1 = arith.constant 0 : i32
    %c0_i32_2 = arith.constant 0 : i32
    return %c0_i32, %c0_i32_0, %c0_i32_1 : i32, i32, i32
  }
  func.func @transform_7(%arg0: i32) -> (i32, i32, i32) {
    %c0_i32 = arith.constant 0 : i32
    %c0_i32_0 = arith.constant 0 : i32
    %c0_i32_1 = arith.constant 0 : i32
    %c0_i32_2 = arith.constant 0 : i32
    return %c0_i32, %c0_i32_0, %c0_i32_1 : i32, i32, i32
  }
  func.func @transform_8(%arg0: i32) -> (i32, i32) {
    %c0_i32 = arith.constant 0 : i32
    %c0_i32_0 = arith.constant 0 : i32
    %c0_i32_1 = arith.constant 0 : i32
    return %c0_i32, %c0_i32_0 : i32, i32
  }
  func.func @transform_9(%arg0: i32) -> (i32, i32) {
    %c0_i32 = arith.constant 0 : i32
    %c0_i32_0 = arith.constant 0 : i32
    %c0_i32_1 = arith.constant 0 : i32
    return %c0_i32, %c0_i32_0 : i32, i32
  }
  func.func @transform_10(%arg0: i32) -> (i32, i32, i32) {
    %c0_i32 = arith.constant 0 : i32
    %c0_i32_0 = arith.constant 0 : i32
    %c0_i32_1 = arith.constant 0 : i32
    return %arg0, %c0_i32, %c0_i32_0 : i32, i32, i32
  }
}

</mosaic_0001>

<bundles_post_ra>
// kernel: tpu_custom_call.1
= control target key start
LH: loop header
LB: loop body
LE: loop exit
PB: predicated region body
PF: predicated region fallthrough
CT: control target
= control target key end

     0   :  { %s3110_s0 = inlined_call_operand.vmem [shape: bf16[1,64,30], index: 0, kind: input, shape index: {}]   ;;  %s3111_s1 = inlined_call_operand.vmem [shape: bf16[1,64,4], index: 1, kind: input, shape index: {}]   ;;  %s3112_s2 = inlined_call_operand.vmem [shape: bf16[30,32], index: 2, kind: input, shape index: {}]   ;;  %s3113_s3 = inlined_call_operand.vmem [shape: bf16[4,32], index: 3, kind: input, shape index: {}]   ;;  %s3114_s4 = inlined_call_operand.vmem [shape: f32[1,32], index: 4, kind: input, shape index: {}]   ;;  %s3115_s5 = inlined_call_operand.vmem [shape: bf16[2,32,128], index: 5, kind: input, shape index: {}]   ;;  %s3116_s6 = inlined_call_operand.vmem [shape: bf16[2,32,128], index: 6, kind: input, shape index: {}]   ;;  %s3117_s7 = inlined_call_operand.vmem [shape: f32[2,1,128], index: 7, kind: input, shape index: {}]   ;;  %s3118_s8 = inlined_call_operand.vmem [shape: f32[1,32], index: 8, kind: input, shape index: {}]   ;;  %s3119_s9 = inlined_call_operand.<no memory space> [shape: f32[1,1], index: 9, kind: input, shape index: {}]   ;;  %s3120_s10 = inlined_call_operand.hbm [shape: f32[1,8,8], index: 10, kind: output, shape index: {}]  }
   0x1   :  { %v15_v0 = vstv %s3119_s9 }
   0x2   :  { %16 = vst [vmem:[#allocation4] sm:$0x1] %v15_v0 }
   0x3   :  { %v59_v1 = vld [vmem:[%s3113_s3] sm:$0x3]  ;;  %vm93_vm0 = vcmask 1041408   ;;  %vm80_vm1 = vcmask 31744   ;;  %v2382_v4 = vld [vmem:[%s3111_s1 + $0x8] sm:$0xff]   ;;  %v2384_v6 = vld [vmem:[%s3111_s1 + $0x10] sm:$0xff]  }
   0x4   :  { %v2381_v2 = vld [vmem:[%s3111_s1] sm:$0xff]   ;;  %2371 = vmatprep.subr.msk.bf16.mxu0 %vm93_vm0, %v59_v1  ;;  %v95_v3 = vsel %vm93_vm0, %v59_v1, 0  ;;  %vm206_vm2 = vcmask 1046528   ;;  %v2386_v7 = vld [vmem:[%s3112_s2 + $0x8] sm:$0x7f]   ;;  %v2385_v9 = vld [vmem:[%s3111_s1 + $0x18] sm:$0xff]  }
   0x5   :  { %2190 = vmatpush3.bf16.msra.mxu0 %v95_v3  ;;  %2191 = vmatprep.mubr.msk.bf16.mxu0 %vm80_vm1, %v2381_v2  ;;  %v2383_v5 = vld [vmem:[%s3112_s2] sm:$0xff]   ;;  %v208_v8 = vsel %vm206_vm2, %v2386_v7, 0  ;;  %vm193_vm3 = vcmask 244736  }
   0x6   :  { %2199 = vmatprep.subr.bf16.mxu0 %v2383_v5  ;;  %v2387_v10 = vld [vmem:[%s3110_s0] sm:$0xff]  }
   0x8   :  { %2192 = vmatmul.mubr.msk.bf16.vlgmr.msra.gmra.mrb[0].mxu0 %vm80_vm1, %v2382_v4 }
   0x9   :  { %2200 = vmatpush3.bf16.msra.mxu0 %v2383_v5  ;;  %2195 = vmatprep.mubr.msk.bf16.mxu0 %vm80_vm1, %v2384_v6 }
   0xa   :  { %2372 = vmatprep.subr.msk.bf16.mxu0 %vm206_vm2, %v2386_v7 }
   0xd   :  { %2202 = vmatpush3.bf16.msra.mxu0 %v208_v8 }
  0x10   :  { %2196 = vmatmul.mubr.msk.bf16.gmra.mrb[4].mxu0 %vm80_vm1, %v2385_v9 }
  0x11   :  { %2203 = vmatprep.mubr.msk.bf16.mxu0 %vm193_vm3, %v2387_v10 }
  0x12   :  { %17 = vsyncpa [#allocation6], 0  ;;  %v2388_v11 = vld [vmem:[%s3110_s0 + $0x8] sm:$0xff]   ;;  %v2389_v12 = vld [vmem:[%s3110_s0 + $0x10] sm:$0xff]   ;;  %v2583_v17 = vmov 0.0   ;;  %vm2584_vm4 = vmmov 0  }
  0x13   :  { %v2390_v13 = vld [vmem:[%s3110_s0 + $0x18] sm:$0xff]   ;;  %v2391_v14 = vld [vmem:[%s3115_s5] sm:$0xff]   ;;  %v2392_v15 = vld [vmem:[%s3115_s5 + $0x8] sm:$0xff]   ;;  %2239 = vmatprep.subr.bf16.mxu0 %v2583_v17  ;;  %v2585_v19 = vmov 0   ;;  %vm290_vm5 = vcmask 261120   ;;  %s2586_s3 = smov 64  }
  0x14   :  { %2211 = vmatprep.subr.bf16.mxu1 %v2391_v14  ;;  %v2693_v16 = vld [vmem:[%s3116_s6] sm:$0xff]   ;;  %v2702_v18 = vld [vmem:[%s3116_s6 + $0x8] sm:$0xff]   ;;  %2379 = vset.pattern.permute.xlu1 %v2585_v19  ;;  %s2587_s22 = smov 32   ;;  %vm2001_vm6 = vcmask 1041409   ;;  %vm2003_vm7 = vcmask 1042434   ;;  %vm2005_vm8 = vcmask 1043459  }
  0x15   :  { %2212 = vmatpush3.bf16.msra.mxu1 %v2391_v14  ;;  %2380 = vset.pattern.permute.xlu0 %v2585_v19  ;;  %v2050_v20 = vld [vmem:[%s3114_s4] ss:$0 sm:$0xff]  ;;  %vm2007_vm9 = vcmask 1044484   ;;  %vm2009_vm10 = vcmask 1045509   ;;  %vm2011_vm11 = vcmask 1046534   ;;  %vm2013_vm12 = vcmask 1047559  }
  0x16   :  { %2213 = vmatprep.subr.bf16.mxu1 %v2392_v15  ;;  %v2051_v49 = vld [vmem:[%s3117_s7] ss:$0 sm:$0xff]  ;;  %vm2016_vm13 = vcmask 64512  }
  0x18   :  { %2204 = vmatmul.mubr.msk.bf16.vlgmr.msra.gmra.mrb[0].mxu0 %vm193_vm3, %v2388_v11 }
  0x19   :  { %2207 = vmatprep.mubr.msk.bf16.mxu0 %vm193_vm3, %v2389_v12  ;;  %2214 = vmatpush3.bf16.msra.mxu1 %v2392_v15 }
  0x1a   :  { %2223 = vmatprep.subr.bf16.mxu1 %v2583_v17  ;;  %2240 = vmatpush3.bf16.msra.mxu0 %v2693_v16 }
  0x1b   :  { %2241 = vmatprep.subr.bf16.mxu0 %v2583_v17 }
  0x1e   :  { %2242 = vmatpush3.bf16.msra.mxu0 %v2702_v18 }
  0x1f   :  { %2255 = vmatprep.subr.bf16.mxu0 %v2583_v17 }
  0x20   :  { %2208 = vmatmul.mubr.msk.bf16.gmra.mrb[4].mxu0 %vm193_vm3, %v2390_v13 }
  0x21   :  { %2243 = vmatprep.mubr.msk.bf16.mxu0 %vm2584_vm4, %v2583_v17 }
  0xeb   :  { %v2205_v21 = vpop.f32.mrb[0].mxu0 }
  0xec   :  { %v284_v22 = vadd.f32 %v2205_v21, %v2050_v20  ;;  %v244_v23 = vpop.f32.mrb[1].mxu0 }
  0xed   :  { %v282_v24 = vadd.f32 %v2050_v20, %v244_v23  ;;  %v2206_v25 = vpop.f32.mrb[2].mxu0 }
  0xee   :  { %293 = vst.msk [vmem:[#allocation2 + $0x10] sm:$0xff] %vm290_vm5, %v284_v22  ;;  %v285_v26 = vadd.f32 %v2206_v25, %v2050_v20  ;;  %v247_v27 = vpop.f32.mrb[3].mxu0 }
  0xef   :  { %291 = vst.msk [vmem:[#allocation2] sm:$0xff] %vm290_vm5, %v282_v24  ;;  %v283_v28 = vadd.f32 %v2050_v20, %v247_v27 }
  0xf0   :  { %294 = vst.msk [vmem:[#allocation2 + $0x18] sm:$0xff] %vm290_vm5, %v285_v26 }
  0xf1   :  { %292 = vst.msk [vmem:[#allocation2 + $0x8] sm:$0xff] %vm290_vm5, %v283_v28 }
  0xf3   :  { %v2209_v29 = vpop.f32.mrb[4].mxu0 }
  0xf4   :  { %v288_v30 = vadd.f32 %v2209_v29, %v2050_v20  ;;  %v260_v31 = vpop.f32.mrb[5].mxu0 }
  0xf5   :  { %v286_v32 = vadd.f32 %v2050_v20, %v260_v31  ;;  %v2210_v33 = vpop.f32.mrb[6].mxu0  ;;  %v310_v41 = vld [vmem:[#allocation2 + $0x10] sm:$0xff] }
  0xf6   :  { %297 = vst.msk [vmem:[#allocation2 + $0x30] sm:$0xff] %vm290_vm5, %v288_v30  ;;  %v289_v34 = vadd.f32 %v2210_v33, %v2050_v20  ;;  %v263_v35 = vpop.f32.mrb[7].mxu0  ;;  %v308_v38 = vld [vmem:[#allocation2] sm:$0xff] }
  0xf7   :  { %295 = vst.msk [vmem:[#allocation2 + $0x20] sm:$0xff] %vm290_vm5, %v286_v32  ;;  %v287_v36 = vadd.f32 %v2050_v20, %v263_v35  ;;  %v311_v37 = vld [vmem:[#allocation2 + $0x18] sm:$0xff] }
  0xf8   :  { %298 = vst.msk [vmem:[#allocation2 + $0x38] sm:$0xff] %vm290_vm5, %v289_v34  ;;  %v309_v39 = vld [vmem:[#allocation2 + $0x8] sm:$0xff]  ;;  %v317_v42 = vpack.c.bf16 %v311_v37, %v310_v41 }
  0xf9   :  { %296 = vst.msk [vmem:[#allocation2 + $0x28] sm:$0xff] %vm290_vm5, %v287_v36  ;;  %v316_v40 = vpack.c.bf16 %v309_v39, %v308_v38 }
  0xfb   :  { %2215 = vmatprep.mubr.msk.bf16.mxu1 %vm290_vm5, %v316_v40 }
  0xfc   :  { %2216 = vmatmul.mubr.msk.bf16.vlgmr.msra.gmra.mrb[0].mxu1 %vm290_vm5, %v317_v42 }
  0xfd   :  { %2224 = vmatpush3.bf16.msra.mxu1 %v2693_v16  ;;  %v314_v47 = vld [vmem:[#allocation2 + $0x30] sm:$0xff] }
  0xfe   :  { %2225 = vmatprep.subr.bf16.mxu1 %v2583_v17  ;;  %v312_v44 = vld [vmem:[#allocation2 + $0x20] sm:$0xff] }
  0xff   :  { %v315_v43 = vld [vmem:[#allocation2 + $0x38] sm:$0xff] }
 0x100   :  { %v313_v45 = vld [vmem:[#allocation2 + $0x28] sm:$0xff]  ;;  %v319_v48 = vpack.c.bf16 %v315_v43, %v314_v47 }
 0x101   :  { %v318_v46 = vpack.c.bf16 %v313_v45, %v312_v44  ;;  %2226 = vmatpush3.bf16.msra.mxu1 %v2702_v18 }
 0x102   :  { %2231 = vmatprep.subr.bf16.mxu1 %v2583_v17 }
 0x103   :  { %2219 = vmatprep.mubr.msk.bf16.mxu1 %vm290_vm5, %v318_v46 }
 0x104   :  { %2220 = vmatmul.mubr.msk.bf16.gmra.mrb[4].mxu1 %vm290_vm5, %v319_v48 }
 0x105   :  { %2227 = vmatprep.mubr.msk.bf16.mxu1 %vm2584_vm4, %v2583_v17 }
 0x10c   :  { %2228 = vmatmul.mubr.bf16.vlgmr.msra.gmra.mrb[8].mxu1 %v2585_v19 }
 0x10d   :  { %2232 = vmatpush3.bf16.msra.mxu1 %v2693_v16  ;;  %2235 = vmatprep.mubr.msk.bf16.mxu1 %vm2584_vm4, %v2583_v17 }
 0x10e   :  { %2233 = vmatprep.subr.bf16.mxu1 %v2583_v17 }
 0x111   :  { %2234 = vmatpush3.bf16.msra.mxu1 %v2702_v18 }
 0x112   :  { %2247 = vmatprep.subr.bf16.mxu1 %v2583_v17 }
 0x1cf   :  { %v2217_v50 = vpop.f32.mrb[0].mxu1 }
 0x1d0   :  { %v2741_v51 = vadd.f32 %v2217_v50, %v2051_v49  ;;  %v384_v52 = vpop.f32.mrb[1].mxu1 }
 0x1d1   :  { %v2218_v53 = vpop.f32.mrb[2].mxu1  ;;  %v385_v1 = vadd.f32 %v2051_v49, %v384_v52 }
 0x1d2   :  { %v2743_v54 = vadd.f32 %v2218_v53, %v2051_v49  ;;  %v387_v55 = vpop.f32.mrb[3].mxu1 }
 0x1d3   :  { %v388_v56 = vadd.f32 %v2051_v49, %v387_v55 }
 0x1d7   :  { %v2221_v57 = vpop.f32.mrb[4].mxu1 }
 0x1d8   :  { %v2745_v58 = vadd.f32 %v2221_v57, %v2051_v49  ;;  %v400_v59 = vpop.f32.mrb[5].mxu1 }
 0x1d9   :  { %v2747_v60 = vadd.f32 %v2051_v49, %v400_v59  ;;  %v2222_v61 = vpop.f32.mrb[6].mxu1 }
 0x1da   :  { %v2749_v62 = vadd.f32 %v2222_v61, %v2051_v49  ;;  %v403_v63 = vpop.f32.mrb[7].mxu1 }
 0x1db   :  { %v2751_v0 = vadd.f32 %v2051_v49, %v403_v63 }
 0x1df   :  { %v473_v2 = vpop.f32.mrb[8].mxu1 }
 0x1e0   :  { %v479_v3 = vadd.f32 %v473_v2, %v385_v1  ;;  %v2229_v4 = vpop.f32.mrb[9].mxu1 }
 0x1e1   :  { %v476_v5 = vpop.f32.mrb[10].mxu1 }
 0x1e2   :  { %2399 = vtanh.f32 %v479_v3  ;;  %v2230_v6 = vpop.f32.mrb[11].mxu1  ;;  %v2060_v8 = vmul.f32 -1.442695, %v479_v3 }
 0x1e4   :  { %2401 = vpow2.f32 %v2060_v8 }
 0x1ec   :  { %v2400_v7 = vpop.eup %2399 }
 0x1ed   :  { %489 = vrot.lane.b32.xlu0 %v2400_v7, %s2586_s3 }
 0x1ee   :  { %v2402_v9 = vpop.eup %2401 }
 0x1ef   :  { %v483_v10 = vadd.f32 1.0, %v2402_v9 }
 0x1f1   :  { %2403 = vrcp.f32 %v483_v10 }
 0x1fb   :  { %v2404_v11 = vpop.eup %2403 }
 0x1fc   :  { %v487_v14 = vmul.f32 0.0, %v2404_v11 }
 0x25f   :  { %v490_v12 = vpop.permute.xlu0 %489 }
 0x260   :  { %v492_v13 = vmul.f32 %v2404_v11, %v490_v12 }
 0x262   :  { %494 = vrot.lane.b32.xlu0 %v492_v13, %s2587_s22 }
 0x2d4   :  { %v495_v15 = vpop.permute.xlu0 %494 }
 0x2d5   :  { %v497_v20 = vadd.f32 %v495_v15, %v487_v14 }
 0x2d7   :  { %2405 = vtanh.f32 %v497_v20 }
 0x2e1   :  { %v2406_v21 = vpop.eup %2405 }
 0x2e2   :  { %500 = vrot.lane.b32.xlu1 %v2406_v21, %s2586_s3 }
 0x354   :  { %v501_v22 = vpop.permute.xlu1 %500 }
 0x355   :  { %v2756_v23 = vmul.f32 %v2404_v11, %v501_v22 }
 0x357   :  { %v511_v24 = vpack.c.bf16 %v2756_v23, %v2756_v23 }
 0x359   :  { %513 = vrot.lane.b32.xlu1 %v511_v24, %s2587_s22 }
 0x3cb   :  { %v514_v25 = vpop.permute.xlu1 %513 }
 0x3cc   :  { %2236 = vmatmul.mubr.msk.bf16.vlgmr.msra.gmra.mrb[12].mxu1 %vm290_vm5, %v514_v25 }
 0x3cd   :  { %2248 = vmatpush3.bf16.msra.mxu1 %v2693_v16  ;;  %2251 = vmatprep.mubr.msk.bf16.mxu1 %vm2584_vm4, %v2583_v17 }
 0x3ce   :  { %2249 = vmatprep.subr.bf16.mxu1 %v2583_v17 }
 0x3d1   :  { %2250 = vmatpush3.bf16.msra.mxu1 %v2702_v18 }
 0x3d2   :  { %2263 = vmatprep.subr.bf16.mxu1 %v2583_v17 }
 0x49f   :  { %v552_v26 = vpop.f32.mrb[12].mxu1 }
 0x4a0   :  { %v558_v27 = vadd.f32 %v552_v26, %v388_v56  ;;  %v2237_v28 = vpop.f32.mrb[13].mxu1 }
 0x4a1   :  { %v555_v29 = vpop.f32.mrb[14].mxu1 }
 0x4a2   :  { %2407 = vtanh.f32 %v558_v27  ;;  %v2238_v30 = vpop.f32.mrb[15].mxu1  ;;  %v2062_v32 = vmul.f32 -1.442695, %v558_v27 }
 0x4a4   :  { %2409 = vpow2.f32 %v2062_v32 }
 0x4ac   :  { %v2408_v31 = vpop.eup %2407 }
 0x4ad   :  { %568 = vrot.lane.b32.xlu0 %v2408_v31, %s2586_s3 }
 0x4ae   :  { %v2410_v33 = vpop.eup %2409 }
 0x4af   :  { %v562_v34 = vadd.f32 1.0, %v2410_v33 }
 0x4b1   :  { %2411 = vrcp.f32 %v562_v34 }
 0x4bb   :  { %v2412_v35 = vpop.eup %2411 }
 0x4bc   :  { %v566_v38 = vmul.f32 %v2412_v35, %v497_v20 }
 0x51f   :  { %v569_v36 = vpop.permute.xlu0 %568 }
 0x520   :  { %v571_v37 = vmul.f32 %v2412_v35, %v569_v36 }
 0x522   :  { %573 = vrot.lane.b32.xlu1 %v571_v37, %s2587_s22 }
 0x594   :  { %v574_v39 = vpop.permute.xlu1 %573 }
 0x595   :  { %v576_v40 = vadd.f32 %v574_v39, %v566_v38 }
 0x597   :  { %2413 = vtanh.f32 %v576_v40 }
 0x5a1   :  { %v2414_v41 = vpop.eup %2413 }
 0x5a2   :  { %579 = vrot.lane.b32.xlu0 %v2414_v41, %s2586_s3 }
 0x614   :  { %v580_v42 = vpop.permute.xlu0 %579 }
 0x615   :  { %v2771_v43 = vmul.f32 %v2412_v35, %v580_v42 }
 0x617   :  { %v591_v44 = vpack.c.bf16 %v2771_v43, %v2771_v43 }
 0x619   :  { %593 = vrot.lane.b32.xlu1 %v591_v44, %s2587_s22 }
 0x68b   :  { %v594_v45 = vpop.permute.xlu1 %593 }
 0x68c   :  { %2244 = vmatmul.mubr.msk.bf16.vlgmr.msra.gmra.mrb[8].mxu0 %vm290_vm5, %v594_v45 }
 0x68d   :  { %2256 = vmatpush3.bf16.msra.mxu0 %v2693_v16  ;;  %2259 = vmatprep.mubr.msk.bf16.mxu0 %vm2584_vm4, %v2583_v17 }
 0x68e   :  { %2257 = vmatprep.subr.bf16.mxu0 %v2583_v17 }
 0x691   :  { %2258 = vmatpush3.bf16.msra.mxu0 %v2702_v18 }
 0x692   :  { %2271 = vmatprep.subr.bf16.mxu0 %v2583_v17 }
 0x75f   :  { %v632_v46 = vpop.f32.mrb[8].mxu0 }
 0x760   :  { %v638_v47 = vadd.f32 %v632_v46, %v2741_v51  ;;  %v2245_v48 = vpop.f32.mrb[9].mxu0 }
 0x761   :  { %v635_v49 = vpop.f32.mrb[10].mxu0 }
 0x762   :  { %2415 = vtanh.f32 %v638_v47  ;;  %v2246_v50 = vpop.f32.mrb[11].mxu0  ;;  %v2064_v53 = vmul.f32 -1.442695, %v638_v47 }
 0x764   :  { %2417 = vpow2.f32 %v2064_v53 }
 0x76c   :  { %v2416_v52 = vpop.eup %2415 }
 0x76d   :  { %648 = vrot.lane.b32.xlu0 %v2416_v52, %s2586_s3 }
 0x76e   :  { %v2418_v55 = vpop.eup %2417 }
 0x76f   :  { %v642_v56 = vadd.f32 1.0, %v2418_v55 }
 0x771   :  { %2419 = vrcp.f32 %v642_v56 }
 0x77b   :  { %v2420_v57 = vpop.eup %2419 }
 0x77c   :  { %v646_v63 = vmul.f32 %v2420_v57, %v576_v40 }
 0x7df   :  { %v649_v59 = vpop.permute.xlu0 %648 }
 0x7e0   :  { %v651_v61 = vmul.f32 %v2420_v57, %v649_v59 }
 0x7e2   :  { %653 = vrot.lane.b32.xlu1 %v651_v61, %s2587_s22 }
 0x854   :  { %v654_v1 = vpop.permute.xlu1 %653 }
 0x855   :  { %v656_v51 = vadd.f32 %v654_v1, %v646_v63 }
 0x857   :  { %2421 = vtanh.f32 %v656_v51 }
 0x861   :  { %v2422_v2 = vpop.eup %2421 }
 0x862   :  { %659 = vrot.lane.b32.xlu0 %v2422_v2, %s2586_s3 }
 0x8d4   :  { %v660_v3 = vpop.permute.xlu0 %659 }
 0x8d5   :  { %v2787_v4 = vmul.f32 %v2420_v57, %v660_v3 }
 0x8d7   :  { %v671_v5 = vpack.c.bf16 %v2787_v4, %v2787_v4 }
 0x8d9   :  { %673 = vrot.lane.b32.xlu1 %v671_v5, %s2587_s22 }
 0x94b   :  { %v674_v6 = vpop.permute.xlu1 %673 }
 0x94c   :  { %2252 = vmatmul.mubr.msk.bf16.vlgmr.msra.gmra.mrb[16].mxu1 %vm290_vm5, %v674_v6 }
 0x94d   :  { %2264 = vmatpush3.bf16.msra.mxu1 %v2693_v16  ;;  %2267 = vmatprep.mubr.msk.bf16.mxu1 %vm2584_vm4, %v2583_v17 }
 0x94e   :  { %2265 = vmatprep.subr.bf16.mxu1 %v2583_v17 }
 0x951   :  { %2266 = vmatpush3.bf16.msra.mxu1 %v2702_v18 }
 0x952   :  { %2279 = vmatprep.subr.bf16.mxu1 %v2583_v17 }
 0xa1f   :  { %v712_v7 = vpop.f32.mrb[16].mxu1 }
 0xa20   :  { %v718_v8 = vadd.f32 %v712_v7, %v2743_v54  ;;  %v2253_v9 = vpop.f32.mrb[17].mxu1 }
 0xa21   :  { %v715_v10 = vpop.f32.mrb[18].mxu1 }
 0xa22   :  { %2423 = vtanh.f32 %v718_v8  ;;  %v2254_v11 = vpop.f32.mrb[19].mxu1  ;;  %v2066_v13 = vmul.f32 -1.442695, %v718_v8 }
 0xa24   :  { %2425 = vpow2.f32 %v2066_v13 }
 0xa2c   :  { %v2424_v12 = vpop.eup %2423 }
 0xa2d   :  { %728 = vrot.lane.b32.xlu0 %v2424_v12, %s2586_s3 }
 0xa2e   :  { %v2426_v14 = vpop.eup %2425 }
 0xa2f   :  { %v722_v15 = vadd.f32 1.0, %v2426_v14 }
 0xa31   :  { %2427 = vrcp.f32 %v722_v15 }
 0xa3b   :  { %v2428_v20 = vpop.eup %2427 }
 0xa3c   :  { %v726_v24 = vmul.f32 %v2428_v20, %v656_v51 }
 0xa9f   :  { %v729_v21 = vpop.permute.xlu0 %728 }
 0xaa0   :  { %v731_v22 = vmul.f32 %v2428_v20, %v729_v21 }
 0xaa2   :  { %733 = vrot.lane.b32.xlu1 %v731_v22, %s2587_s22 }
 0xb14   :  { %v734_v25 = vpop.permute.xlu1 %733 }
 0xb15   :  { %v736_v54 = vadd.f32 %v734_v25, %v726_v24 }
 0xb17   :  { %2429 = vtanh.f32 %v736_v54 }
 0xb21   :  { %v2430_v26 = vpop.eup %2429 }
 0xb22   :  { %739 = vrot.lane.b32.xlu0 %v2430_v26, %s2586_s3 }
 0xb94   :  { %v740_v27 = vpop.permute.xlu0 %739 }
 0xb95   :  { %v2803_v28 = vmul.f32 %v2428_v20, %v740_v27 }
 0xb97   :  { %v751_v29 = vpack.c.bf16 %v2803_v28, %v2803_v28 }
 0xb99   :  { %753 = vrot.lane.b32.xlu1 %v751_v29, %s2587_s22 }
 0xc0b   :  { %v754_v30 = vpop.permute.xlu1 %753 }
 0xc0c   :  { %2260 = vmatmul.mubr.msk.bf16.vlgmr.msra.gmra.mrb[12].mxu0 %vm290_vm5, %v754_v30 }
 0xc0d   :  { %2272 = vmatpush3.bf16.msra.mxu0 %v2693_v16  ;;  %2275 = vmatprep.mubr.msk.bf16.mxu0 %vm2584_vm4, %v2583_v17 }
 0xc0e   :  { %2273 = vmatprep.subr.bf16.mxu0 %v2583_v17 }
 0xc11   :  { %2274 = vmatpush3.bf16.msra.mxu0 %v2702_v18 }
 0xcdf   :  { %v792_v31 = vpop.f32.mrb[12].mxu0 }
 0xce0   :  { %v798_v32 = vadd.f32 %v792_v31, %v2747_v60  ;;  %v2261_v33 = vpop.f32.mrb[13].mxu0  ;;  %v2395_v31 = vld [vmem:[%s3115_s5 + $0x10] sm:$0xff]  }
 0xce1   :  { %v795_v34 = vpop.f32.mrb[14].mxu0  ;;  %2287 = vmatprep.subr.bf16.mxu0 %v2395_v31 }
 0xce2   :  { %2431 = vtanh.f32 %v798_v32  ;;  %v2262_v35 = vpop.f32.mrb[15].mxu0  ;;  %v2068_v37 = vmul.f32 -1.442695, %v798_v32 }
 0xce4   :  { %2433 = vpow2.f32 %v2068_v37 }
 0xcec   :  { %v2432_v36 = vpop.eup %2431 }
 0xced   :  { %808 = vrot.lane.b32.xlu0 %v2432_v36, %s2586_s3 }
 0xcee   :  { %v2434_v38 = vpop.eup %2433 }
 0xcef   :  { %v802_v39 = vadd.f32 1.0, %v2434_v38 }
 0xcf1   :  { %2435 = vrcp.f32 %v802_v39 }
 0xcfb   :  { %v2436_v40 = vpop.eup %2435 }
 0xcfc   :  { %v806_v44 = vmul.f32 %v2436_v40, %v736_v54 }
 0xd5f   :  { %v809_v41 = vpop.permute.xlu0 %808 }
 0xd60   :  { %v811_v42 = vmul.f32 %v2436_v40, %v809_v41  ;;  %v2875_v41 = vld [vmem:[%s3116_s6 + $0x10] sm:$0xff]  }
 0xd62   :  { %813 = vrot.lane.b32.xlu1 %v811_v42, %s2587_s22  ;;  %v2883_v42 = vld [vmem:[%s3116_s6 + $0x18] sm:$0xff]  }
 0xdd4   :  { %v814_v45 = vpop.permute.xlu1 %813 }
 0xdd5   :  { %v816_v60 = vadd.f32 %v814_v45, %v806_v44 }
 0xdd7   :  { %2437 = vtanh.f32 %v816_v60 }
 0xde1   :  { %v2438_v46 = vpop.eup %2437 }
 0xde2   :  { %819 = vrot.lane.b32.xlu0 %v2438_v46, %s2586_s3 }
 0xe54   :  { %v820_v47 = vpop.permute.xlu0 %819 }
 0xe55   :  { %v2818_v48 = vmul.f32 %v2436_v40, %v820_v47 }
 0xe57   :  { %v831_v49 = vpack.c.bf16 %v2818_v48, %v2818_v48 }
 0xe59   :  { %833 = vrot.lane.b32.xlu1 %v831_v49, %s2587_s22 }
 0xecb   :  { %v834_v50 = vpop.permute.xlu1 %833 }
 0xecc   :  { %2268 = vmatmul.mubr.msk.bf16.vlgmr.msra.gmra.mrb[20].mxu1 %vm290_vm5, %v834_v50 }
 0xecd   :  { %2280 = vmatpush3.bf16.msra.mxu1 %v2693_v16  ;;  %2283 = vmatprep.mubr.msk.bf16.mxu1 %vm2584_vm4, %v2583_v17 }
 0xece   :  { %2281 = vmatprep.subr.bf16.mxu1 %v2583_v17 }
 0xed1   :  { %2282 = vmatpush3.bf16.msra.mxu1 %v2702_v18 }
 0xed2   :  { %2299 = vmatprep.subr.bf16.mxu1 %v2583_v17 }
 0xf9f   :  { %v872_v52 = vpop.f32.mrb[20].mxu1 }
 0xfa0   :  { %v878_v53 = vadd.f32 %v872_v52, %v2751_v0  ;;  %v2269_v55 = vpop.f32.mrb[21].mxu1 }
 0xfa1   :  { %v875_v56 = vpop.f32.mrb[22].mxu1  ;;  %v2911_v55 = vld [vmem:[%s3117_s7 + $0x1] ss:$0 sm:$0xff] }
 0xfa2   :  { %2439 = vtanh.f32 %v878_v53  ;;  %v2270_v57 = vpop.f32.mrb[23].mxu1  ;;  %v2070_v16 = vmul.f32 -1.442695, %v878_v53 }
 0xfa4   :  { %2441 = vpow2.f32 %v2070_v16 }
 0xfac   :  { %v2440_v59 = vpop.eup %2439 }
 0xfad   :  { %888 = vrot.lane.b32.xlu0 %v2440_v59, %s2586_s3 }
 0xfae   :  { %v2442_v61 = vpop.eup %2441 }
 0xfaf   :  { %v882_v63 = vadd.f32 1.0, %v2442_v61 }
 0xfb1   :  { %2443 = vrcp.f32 %v882_v63 }
 0xfbb   :  { %v2444_v1 = vpop.eup %2443 }
 0xfbc   :  { %v886_v2 = vmul.f32 %v2444_v1, %v816_v60 }
0x101f   :  { %v889_v51 = vpop.permute.xlu0 %888 }
0x1020   :  { %v891_v18 = vmul.f32 %v2444_v1, %v889_v51 }
0x1022   :  { %893 = vrot.lane.b32.xlu1 %v891_v18, %s2587_s22 }
0x1094   :  { %v894_v3 = vpop.permute.xlu1 %893 }
0x1095   :  { %v896_v0 = vadd.f32 %v894_v3, %v886_v2 }
0x1097   :  { %2445 = vtanh.f32 %v896_v0 }
0x10a1   :  { %v2446_v5 = vpop.eup %2445 }
0x10a2   :  { %899 = vrot.lane.b32.xlu0 %v2446_v5, %s2586_s3 }
0x1114   :  { %v900_v6 = vpop.permute.xlu0 %899 }
0x1115   :  { %v2834_v7 = vmul.f32 %v2444_v1, %v900_v6 }
0x1117   :  { %v911_v8 = vpack.c.bf16 %v2834_v7, %v2834_v7 }
0x1119   :  { %913 = vrot.lane.b32.xlu1 %v911_v8, %s2587_s22 }
0x118b   :  { %v914_v9 = vpop.permute.xlu1 %913 }
0x118c   :  { %2276 = vmatmul.mubr.msk.bf16.vlgmr.msra.gmra.mrb[16].mxu0 %vm290_vm5, %v914_v9 }
0x118d   :  { %2288 = vmatpush3.bf16.msra.mxu0 %v2395_v31 }
0x125f   :  { %v952_v10 = vpop.f32.mrb[16].mxu0 }
0x1260   :  { %v958_v11 = vadd.f32 %v952_v10, %v2745_v58  ;;  %v2277_v12 = vpop.f32.mrb[17].mxu0 }
0x1261   :  { %v955_v13 = vpop.f32.mrb[18].mxu0 }
0x1262   :  { %2447 = vtanh.f32 %v958_v11  ;;  %v2278_v14 = vpop.f32.mrb[19].mxu0  ;;  %v2072_v20 = vmul.f32 -1.442695, %v958_v11 }
0x1264   :  { %2449 = vpow2.f32 %v2072_v20 }
0x126c   :  { %v2448_v15 = vpop.eup %2447 }
0x126d   :  { %968 = vrot.lane.b32.xlu0 %v2448_v15, %s2586_s3 }
0x126e   :  { %v2450_v21 = vpop.eup %2449 }
0x126f   :  { %v962_v22 = vadd.f32 1.0, %v2450_v21 }
0x1271   :  { %2451 = vrcp.f32 %v962_v22 }
0x127b   :  { %v2452_v24 = vpop.eup %2451 }
0x127c   :  { %v966_v58 = vmul.f32 %v2452_v24, %v896_v0 }
0x12df   :  { %v969_v25 = vpop.permute.xlu0 %968 }
0x12e0   :  { %v971_v54 = vmul.f32 %v2452_v24, %v969_v25 }
0x12e2   :  { %973 = vrot.lane.b32.xlu1 %v971_v54, %s2587_s22 }
0x12e6   :  { %505 = vrot.lane.b32.xlu1 %v2756_v23, %s2587_s22  ;;  %v2396_v23 = vld [vmem:[%s3115_s5 + $0x18] sm:$0xff]  }
0x12e7   :  { %2289 = vmatprep.subr.bf16.mxu0 %v2396_v23 }
0x12e8   :  { %2290 = vmatpush3.bf16.msra.mxu0 %v2396_v23 }
0x12e9   :  { %2315 = vmatprep.subr.bf16.mxu0 %v2583_v17 }
0x12ea   :  { %664 = vrot.lane.b32.xlu1 %v2787_v4, %s2587_s22 }
0x1354   :  { %v974_v26 = vpop.permute.xlu1 %973 }
0x1355   :  { %v2847_v27 = vadd.f32 %v974_v26, %v966_v58 }
0x1357   :  { %2453 = vtanh.f32 %v2847_v27 }
0x1358   :  { %v506_v29 = vpop.permute.xlu1 %505 }
0x1359   :  { %508 = vst.msk [vmem:[#allocation2] sm:$0xff] %vm290_vm5, %v506_v29 }
0x135c   :  { %v665_v30 = vpop.permute.xlu1 %664 }
0x135d   :  { %668 = vst.msk [vmem:[#allocation2 + $0x10] sm:$0xff] %vm290_vm5, %v665_v30 }
0x1360   :  { %v1081_v37 = vld [vmem:[#allocation2] sm:$0xff] }
0x1361   :  { %v2454_v4 = vpop.eup %2453 }
0x1362   :  { %979 = vrot.lane.b32.xlu0 %v2454_v4, %s2586_s3 }
0x1366   :  { %584 = vrot.lane.b32.xlu0 %v2771_v43, %s2587_s22 }
0x136a   :  { %744 = vrot.lane.b32.xlu0 %v2803_v28, %s2587_s22  ;;  %v1083_v28 = vld [vmem:[#allocation2 + $0x10] sm:$0xff] }
0x13d4   :  { %v980_v32 = vpop.permute.xlu0 %979 }
0x13d5   :  { %v2864_v33 = vmul.f32 %v2452_v24, %v980_v32 }
0x13d7   :  { %v991_v34 = vpack.c.bf16 %v2864_v33, %v2864_v33 }
0x13d8   :  { %v585_v35 = vpop.permute.xlu0 %584 }
0x13d9   :  { %588 = vst.msk [vmem:[#allocation2 + $0x8] sm:$0xff] %vm290_vm5, %v585_v35  ;;  %993 = vrot.lane.b32.xlu1 %v991_v34, %s2587_s22 }
0x13dc   :  { %v745_v36 = vpop.permute.xlu0 %744 }
0x13dd   :  { %748 = vst.msk [vmem:[#allocation2 + $0x18] sm:$0xff] %vm290_vm5, %v745_v36 }
0x13e0   :  { %v1082_v38 = vld [vmem:[#allocation2 + $0x8] sm:$0xff] }
0x13e1   :  { %v1089_v43 = vpack.c.bf16 %v1082_v38, %v1081_v37 }
0x13e3   :  { %2291 = vmatprep.mubr.msk.bf16.mxu0 %vm290_vm5, %v1089_v43 }
0x13e4   :  { %v1084_v39 = vld [vmem:[#allocation2 + $0x18] sm:$0xff] }
0x13e5   :  { %v1090_v40 = vpack.c.bf16 %v1084_v39, %v1083_v28 }
0x13e7   :  { %2292 = vmatmul.mubr.msk.bf16.vlgmr.msra.gmra.mrb[20].mxu0 %vm290_vm5, %v1090_v40 }
0x13e8   :  { %2316 = vmatpush3.bf16.msra.mxu0 %v2875_v41 }
0x13e9   :  { %2317 = vmatprep.subr.bf16.mxu0 %v2583_v17 }
0x13ec   :  { %2318 = vmatpush3.bf16.msra.mxu0 %v2883_v42 }
0x13ed   :  { %2331 = vmatprep.subr.bf16.mxu0 %v2583_v17 }
0x144b   :  { %v994_v44 = vpop.permute.xlu1 %993 }
0x144c   :  { %2284 = vmatmul.mubr.msk.bf16.vlgmr.msra.gmra.mrb[24].mxu1 %vm290_vm5, %v994_v44 }
0x144d   :  { %2300 = vmatpush3.bf16.msra.mxu1 %v2875_v41  ;;  %2303 = vmatprep.mubr.msk.bf16.mxu1 %vm2584_vm4, %v2583_v17 }
0x144e   :  { %2301 = vmatprep.subr.bf16.mxu1 %v2583_v17 }
0x1451   :  { %2302 = vmatpush3.bf16.msra.mxu1 %v2883_v42 }
0x1452   :  { %2307 = vmatprep.subr.bf16.mxu1 %v2583_v17 }
0x1454   :  { %2304 = vmatmul.mubr.bf16.vlgmr.msra.gmra.mrb[28].mxu1 %v2585_v19 }
0x1455   :  { %2308 = vmatpush3.bf16.msra.mxu1 %v2875_v41  ;;  %2311 = vmatprep.mubr.msk.bf16.mxu1 %vm2584_vm4, %v2583_v17 }
0x1456   :  { %2309 = vmatprep.subr.bf16.mxu1 %v2583_v17 }
0x1459   :  { %2310 = vmatpush3.bf16.msra.mxu1 %v2883_v42 }
0x145a   :  { %2323 = vmatprep.subr.bf16.mxu1 %v2583_v17 }
0x14ba   :  { %v2901_v45 = vpop.f32.mrb[20].mxu0 }
0x14bb   :  { %v1157_v60 = vpop.f32.mrb[21].mxu0 }
0x14bc   :  { %v2903_v46 = vpop.f32.mrb[22].mxu0  ;;  %v1158_v56 = vadd.f32 %v2911_v55, %v1157_v60 }
0x14bd   :  { %v2905_v47 = vpop.f32.mrb[23].mxu0 }
0x14be   :  { %v1161_v23 = vadd.f32 %v2911_v55, %v2905_v47 }
0x151f   :  { %v1032_v49 = vpop.f32.mrb[24].mxu1 }
0x1520   :  { %v1038_v19 = vadd.f32 %v1032_v49, %v2749_v62  ;;  %v2285_v50 = vpop.f32.mrb[25].mxu1 }
0x1521   :  { %v1035_v52 = vpop.f32.mrb[26].mxu1 }
0x1522   :  { %v2286_v53 = vpop.f32.mrb[27].mxu1  ;;  %v2074_v11 = vmul.f32 -1.442695, %v1038_v19 }
0x1527   :  { %v1243_v57 = vpop.f32.mrb[28].mxu1 }
0x1528   :  { %v1249_v59 = vadd.f32 %v1243_v57, %v1158_v56  ;;  %v2305_v16 = vpop.f32.mrb[29].mxu1 }
0x1529   :  { %v1246_v61 = vpop.f32.mrb[30].mxu1 }
0x152a   :  { %2455 = vtanh.f32 %v1249_v59  ;;  %v2306_v63 = vpop.f32.mrb[31].mxu1  ;;  %v2093_v62 = vmul.f32 -1.442695, %v1249_v59 }
0x152c   :  { %2457 = vpow2.f32 %v2093_v62 }
0x1534   :  { %v2456_v1 = vpop.eup %2455 }
0x1535   :  { %1259 = vrot.lane.b32.xlu0 %v2456_v1, %s2586_s3 }
0x1536   :  { %v2458_v51 = vpop.eup %2457 }
0x1537   :  { %v1253_v18 = vadd.f32 1.0, %v2458_v51 }
0x1539   :  { %2459 = vrcp.f32 %v1253_v18 }
0x1543   :  { %v2460_v2 = vpop.eup %2459 }
0x1544   :  { %v1257_v5 = vmul.f32 0.0, %v2460_v2 }
0x15a7   :  { %v1260_v3 = vpop.permute.xlu0 %1259 }
0x15a8   :  { %v1262_v0 = vmul.f32 %v2460_v2, %v1260_v3  ;;  %v1166_v3 = vadd.f32 %v2901_v45, %v2911_v55 }
0x15aa   :  { %1264 = vrot.lane.b32.xlu1 %v1262_v0, %s2587_s22 }
0x161c   :  { %v1265_v6 = vpop.permute.xlu1 %1264 }
0x161d   :  { %v1267_v8 = vadd.f32 %v1265_v6, %v1257_v5 }
0x161f   :  { %2461 = vtanh.f32 %v1267_v8 }
0x1620   :  { %2463 = vtanh.f32 %v1038_v19 }
0x1621   :  { %2465 = vpow2.f32 %v2074_v11 }
0x1629   :  { %v2462_v9 = vpop.eup %2461 }
0x162a   :  { %1270 = vrot.lane.b32.xlu0 %v2462_v9, %s2586_s3  ;;  %v2464_v10 = vpop.eup %2463 }
0x162b   :  { %v2466_v12 = vpop.eup %2465 }
0x162c   :  { %v1042_v13 = vadd.f32 1.0, %v2466_v12 }
0x162e   :  { %1048 = vrot.lane.b32.xlu0 %v2464_v10, %s2586_s3  ;;  %2467 = vrcp.f32 %v1042_v13 }
0x1638   :  { %v2468_v21 = vpop.eup %2467 }
0x1639   :  { %v1046_v54 = vmul.f32 %v2468_v21, %v2847_v27 }
0x169c   :  { %v1271_v14 = vpop.permute.xlu0 %1270 }
0x169d   :  { %v2918_v15 = vmul.f32 %v2460_v2, %v1271_v14 }
0x169f   :  { %v1280_v20 = vpack.c.bf16 %v2918_v15, %v2918_v15 }
0x16a0   :  { %v1049_v22 = vpop.permute.xlu0 %1048 }
0x16a1   :  { %v1051_v24 = vmul.f32 %v2468_v21, %v1049_v22  ;;  %1282 = vrot.lane.b32.xlu1 %v1280_v20, %s2587_s22 }
0x16a3   :  { %1053 = vrot.lane.b32.xlu0 %v1051_v24, %s2587_s22 }
0x1713   :  { %v1283_v25 = vpop.permute.xlu1 %1282 }
0x1714   :  { %2312 = vmatmul.mubr.msk.bf16.vlgmr.msra.gmra.mrb[32].mxu1 %vm290_vm5, %v1283_v25 }
0x1715   :  { %v1054_v58 = vpop.permute.xlu0 %1053  ;;  %2324 = vmatpush3.bf16.msra.mxu1 %v2875_v41  ;;  %2327 = vmatprep.mubr.msk.bf16.mxu1 %vm2584_vm4, %v2583_v17 }
0x1716   :  { %v1056_v26 = vadd.f32 %v1054_v58, %v1046_v54  ;;  %2325 = vmatprep.subr.bf16.mxu1 %v2583_v17 }
0x1718   :  { %2469 = vtanh.f32 %v1056_v26 }
0x1719   :  { %2326 = vmatpush3.bf16.msra.mxu1 %v2883_v42 }
0x171a   :  { %2339 = vmatprep.subr.bf16.mxu1 %v2583_v17 }
0x1722   :  { %v2470_v29 = vpop.eup %2469 }
0x1723   :  { %1059 = vrot.lane.b32.xlu0 %v2470_v29, %s2586_s3 }
0x1727   :  { %824 = vrot.lane.b32.xlu0 %v2818_v48, %s2587_s22 }
0x172b   :  { %984 = vrot.lane.b32.xlu0 %v2864_v33, %s2587_s22 }
0x1795   :  { %v1060_v27 = vpop.permute.xlu0 %1059 }
0x1796   :  { %v1062_v49 = vmul.f32 %v2468_v21, %v1060_v27  ;;  %v1169_v27 = vadd.f32 %v2903_v46, %v2911_v55 }
0x1799   :  { %v825_v30 = vpop.permute.xlu0 %824 }
0x179a   :  { %828 = vst.msk [vmem:[#allocation2 + $0x20] sm:$0xff] %vm290_vm5, %v825_v30 }
0x179d   :  { %v985_v31 = vpop.permute.xlu0 %984 }
0x179e   :  { %988 = vst.msk [vmem:[#allocation2 + $0x30] sm:$0xff] %vm290_vm5, %v985_v31 }
0x17a1   :  { %v1085_v57 = vld [vmem:[#allocation2 + $0x20] sm:$0xff] }
0x17a5   :  { %v1087_v16 = vld [vmem:[#allocation2 + $0x30] sm:$0xff] }
0x17e7   :  { %v1321_v4 = vpop.f32.mrb[32].mxu1 }
0x17e8   :  { %v1327_v32 = vadd.f32 %v1321_v4, %v1161_v23  ;;  %v2313_v34 = vpop.f32.mrb[33].mxu1 }
0x17e9   :  { %v1324_v35 = vpop.f32.mrb[34].mxu1 }
0x17ea   :  { %2471 = vtanh.f32 %v1327_v32  ;;  %v2314_v36 = vpop.f32.mrb[35].mxu1  ;;  %v2095_v33 = vmul.f32 -1.442695, %v1327_v32 }
0x17ec   :  { %2473 = vpow2.f32 %v2095_v33 }
0x17f4   :  { %v2472_v48 = vpop.eup %2471 }
0x17f5   :  { %1337 = vrot.lane.b32.xlu1 %v2472_v48, %s2586_s3 }
0x17f6   :  { %v2474_v37 = vpop.eup %2473 }
0x17f7   :  { %v1331_v38 = vadd.f32 1.0, %v2474_v37 }
0x17f9   :  { %2475 = vrcp.f32 %v1331_v38 }
0x1803   :  { %v2476_v43 = vpop.eup %2475 }
0x1804   :  { %v1335_v40 = vmul.f32 %v2476_v43, %v1267_v8 }
0x1867   :  { %v1338_v28 = vpop.permute.xlu1 %1337 }
0x1868   :  { %v1340_v39 = vmul.f32 %v2476_v43, %v1338_v28 }
0x186a   :  { %1342 = vrot.lane.b32.xlu1 %v1340_v39, %s2587_s22 }
0x18dc   :  { %v1343_v44 = vpop.permute.xlu1 %1342 }
0x18dd   :  { %v1345_v60 = vadd.f32 %v1343_v44, %v1335_v40 }
0x18df   :  { %2477 = vtanh.f32 %v1345_v60 }
0x18e9   :  { %v2478_v47 = vpop.eup %2477 }
0x18ea   :  { %1348 = vrot.lane.b32.xlu1 %v2478_v47, %s2586_s3 }
0x18ee   :  { %904 = vrot.lane.b32.xlu1 %v2834_v7, %s2587_s22 }
0x18f2   :  { %1064 = vrot.lane.b32.xlu1 %v1062_v49, %s2587_s22 }
0x195c   :  { %v1349_v19 = vpop.permute.xlu1 %1348 }
0x195d   :  { %v2947_v50 = vmul.f32 %v2476_v43, %v1349_v19 }
0x195f   :  { %v1358_v52 = vpack.c.bf16 %v2947_v50, %v2947_v50 }
0x1960   :  { %v905_v53 = vpop.permute.xlu1 %904 }
0x1961   :  { %908 = vst.msk [vmem:[#allocation2 + $0x28] sm:$0xff] %vm290_vm5, %v905_v53  ;;  %1360 = vrot.lane.b32.xlu0 %v1358_v52, %s2587_s22 }
0x1964   :  { %v1065_v56 = vpop.permute.xlu1 %1064 }
0x1965   :  { %1068 = vst.msk [vmem:[#allocation2 + $0x38] sm:$0xff] %vm290_vm5, %v1065_v56 }
0x1968   :  { %v1086_v59 = vld [vmem:[#allocation2 + $0x28] sm:$0xff] }
0x1969   :  { %v1091_v7 = vpack.c.bf16 %v1086_v59, %v1085_v57 }
0x196b   :  { %2295 = vmatprep.mubr.msk.bf16.mxu0 %vm290_vm5, %v1091_v7 }
0x196c   :  { %v1088_v61 = vld [vmem:[#allocation2 + $0x38] sm:$0xff] }
0x196d   :  { %v1092_v63 = vpack.c.bf16 %v1088_v61, %v1087_v16 }
0x196f   :  { %2296 = vmatmul.mubr.msk.bf16.gmra.mrb[24].mxu0 %vm290_vm5, %v1092_v63 }
0x1970   :  { %2319 = vmatprep.mubr.msk.bf16.mxu0 %vm2584_vm4, %v2583_v17 }
0x19d3   :  { %v1361_v1 = vpop.permute.xlu0 %1360 }
0x19d4   :  { %2320 = vmatmul.mubr.msk.bf16.vlgmr.msra.gmra.mrb[28].mxu0 %vm290_vm5, %v1361_v1 }
0x19d5   :  { %2332 = vmatpush3.bf16.msra.mxu0 %v2875_v41  ;;  %2335 = vmatprep.mubr.msk.bf16.mxu0 %vm2584_vm4, %v2583_v17 }
0x19d6   :  { %2333 = vmatprep.subr.bf16.mxu0 %v2583_v17 }
0x19d9   :  { %2334 = vmatpush3.bf16.msra.mxu0 %v2883_v42 }
0x19da   :  { %2347 = vmatprep.subr.bf16.mxu0 %v2583_v17 }
0x1a42   :  { %v2965_v62 = vpop.f32.mrb[24].mxu0 }
0x1a43   :  { %v2967_v51 = vpop.f32.mrb[25].mxu0 }
0x1a44   :  { %v2969_v18 = vpop.f32.mrb[26].mxu0  ;;  %v1174_v49 = vadd.f32 %v2911_v55, %v2967_v51 }
0x1a45   :  { %v2971_v2 = vpop.f32.mrb[27].mxu0 }
0x1aa7   :  { %v1399_v0 = vpop.f32.mrb[28].mxu0 }
0x1aa8   :  { %v1405_v5 = vadd.f32 %v1399_v0, %v1166_v3  ;;  %v2321_v6 = vpop.f32.mrb[29].mxu0 }
0x1aa9   :  { %v1402_v8 = vpop.f32.mrb[30].mxu0 }
0x1aaa   :  { %2479 = vtanh.f32 %v1405_v5  ;;  %v2322_v9 = vpop.f32.mrb[31].mxu0  ;;  %v2097_v11 = vmul.f32 -1.442695, %v1405_v5 }
0x1aac   :  { %2481 = vpow2.f32 %v2097_v11 }
0x1ab4   :  { %v2480_v10 = vpop.eup %2479 }
0x1ab5   :  { %1415 = vrot.lane.b32.xlu1 %v2480_v10, %s2586_s3 }
0x1ab6   :  { %v2482_v12 = vpop.eup %2481 }
0x1ab7   :  { %v1409_v13 = vadd.f32 1.0, %v2482_v12  ;;  %v1177_v12 = vadd.f32 %v2911_v55, %v2971_v2 }
0x1ab9   :  { %2483 = vrcp.f32 %v1409_v13 }
0x1ac3   :  { %v2484_v14 = vpop.eup %2483 }
0x1ac4   :  { %v1413_v45 = vmul.f32 %v2484_v14, %v1345_v60 }
0x1b27   :  { %v1416_v20 = vpop.permute.xlu1 %1415 }
0x1b28   :  { %v1418_v21 = vmul.f32 %v2484_v14, %v1416_v20 }
0x1b2a   :  { %1420 = vrot.lane.b32.xlu0 %v1418_v21, %s2587_s22 }
0x1b9c   :  { %v1421_v22 = vpop.permute.xlu0 %1420 }
0x1b9d   :  { %v1423_v24 = vadd.f32 %v1421_v22, %v1413_v45 }
0x1b9f   :  { %2485 = vtanh.f32 %v1423_v24 }
0x1ba9   :  { %v2486_v25 = vpop.eup %2485 }
0x1baa   :  { %1426 = vrot.lane.b32.xlu1 %v2486_v25, %s2586_s3 }
0x1c1c   :  { %v1427_v54 = vpop.permute.xlu1 %1426 }
0x1c1d   :  { %v2978_v58 = vmul.f32 %v2484_v14, %v1427_v54 }
0x1c1f   :  { %v1436_v26 = vpack.c.bf16 %v2978_v58, %v2978_v58 }
0x1c21   :  { %1438 = vrot.lane.b32.xlu0 %v1436_v26, %s2587_s22 }
0x1c93   :  { %v1439_v29 = vpop.permute.xlu0 %1438 }
0x1c94   :  { %2328 = vmatmul.mubr.msk.bf16.vlgmr.msra.gmra.mrb[36].mxu1 %vm290_vm5, %v1439_v29 }
0x1c95   :  { %2340 = vmatpush3.bf16.msra.mxu1 %v2875_v41  ;;  %2343 = vmatprep.mubr.msk.bf16.mxu1 %vm2584_vm4, %v2583_v17 }
0x1c96   :  { %2341 = vmatprep.subr.bf16.mxu1 %v2583_v17 }
0x1c99   :  { %2342 = vmatpush3.bf16.msra.mxu1 %v2883_v42 }
0x1c9a   :  { %2355 = vmatprep.subr.bf16.mxu1 %v2583_v17 }
0x1d67   :  { %v1477_v30 = vpop.f32.mrb[36].mxu1 }
0x1d68   :  { %v1483_v31 = vadd.f32 %v1477_v30, %v1169_v27  ;;  %v2329_v23 = vpop.f32.mrb[37].mxu1 }
0x1d69   :  { %v1480_v4 = vpop.f32.mrb[38].mxu1 }
0x1d6a   :  { %2487 = vtanh.f32 %v1483_v31  ;;  %v2330_v32 = vpop.f32.mrb[39].mxu1  ;;  %v2099_v35 = vmul.f32 -1.442695, %v1483_v31 }
0x1d6b   :  { %v1182_v32 = vadd.f32 %v2965_v62, %v2911_v55 }
0x1d6c   :  { %2489 = vpow2.f32 %v2099_v35 }
0x1d74   :  { %v2488_v34 = vpop.eup %2487 }
0x1d75   :  { %1493 = vrot.lane.b32.xlu1 %v2488_v34, %s2586_s3 }
0x1d76   :  { %v2490_v36 = vpop.eup %2489 }
0x1d77   :  { %v1487_v48 = vadd.f32 1.0, %v2490_v36 }
0x1d79   :  { %2491 = vrcp.f32 %v1487_v48 }
0x1d83   :  { %v2492_v33 = vpop.eup %2491 }
0x1d84   :  { %v1491_v46 = vmul.f32 %v2492_v33, %v1423_v24 }
0x1de7   :  { %v1494_v37 = vpop.permute.xlu1 %1493 }
0x1de8   :  { %v1496_v38 = vmul.f32 %v2492_v33, %v1494_v37 }
0x1dea   :  { %1498 = vrot.lane.b32.xlu0 %v1496_v38, %s2587_s22 }
0x1e5c   :  { %v1499_v43 = vpop.permute.xlu0 %1498 }
0x1e5d   :  { %v1501_v28 = vadd.f32 %v1499_v43, %v1491_v46 }
0x1e5f   :  { %2493 = vtanh.f32 %v1501_v28 }
0x1e69   :  { %v2494_v39 = vpop.eup %2493 }
0x1e6a   :  { %1504 = vrot.lane.b32.xlu1 %v2494_v39, %s2586_s3 }
0x1edc   :  { %v1505_v40 = vpop.permute.xlu1 %1504 }
0x1edd   :  { %v2995_v44 = vmul.f32 %v2492_v33, %v1505_v40 }
0x1edf   :  { %v1514_v60 = vpack.c.bf16 %v2995_v44, %v2995_v44 }
0x1ee1   :  { %1516 = vrot.lane.b32.xlu0 %v1514_v60, %s2587_s22 }
0x1f53   :  { %v1517_v47 = vpop.permute.xlu0 %1516 }
0x1f54   :  { %2336 = vmatmul.mubr.msk.bf16.vlgmr.msra.gmra.mrb[32].mxu0 %vm290_vm5, %v1517_v47 }
0x1f55   :  { %2348 = vmatpush3.bf16.msra.mxu0 %v2875_v41  ;;  %2351 = vmatprep.mubr.msk.bf16.mxu0 %vm2584_vm4, %v2583_v17 }
0x1f56   :  { %2349 = vmatprep.subr.bf16.mxu0 %v2583_v17 }
0x1f59   :  { %2350 = vmatpush3.bf16.msra.mxu0 %v2883_v42 }
0x2027   :  { %v1555_v19 = vpop.f32.mrb[32].mxu0 }
0x2028   :  { %v1561_v52 = vadd.f32 %v1555_v19, %v1174_v49  ;;  %v2337_v53 = vpop.f32.mrb[33].mxu0 }
0x2029   :  { %v1558_v56 = vpop.f32.mrb[34].mxu0 }
0x202a   :  { %2495 = vtanh.f32 %v1561_v52  ;;  %v2338_v57 = vpop.f32.mrb[35].mxu0  ;;  %v2101_v7 = vmul.f32 -1.442695, %v1561_v52 }
0x202b   :  { %v1185_v57 = vadd.f32 %v2969_v18, %v2911_v55 }
0x202c   :  { %2497 = vpow2.f32 %v2101_v7 }
0x2034   :  { %v2496_v59 = vpop.eup %2495 }
0x2035   :  { %1571 = vrot.lane.b32.xlu1 %v2496_v59, %s2586_s3 }
0x2036   :  { %v2498_v16 = vpop.eup %2497 }
0x2037   :  { %v1565_v61 = vadd.f32 1.0, %v2498_v16 }
0x2039   :  { %2499 = vrcp.f32 %v1565_v61 }
0x2043   :  { %v2500_v63 = vpop.eup %2499 }
0x2044   :  { %v1569_v51 = vmul.f32 %v2500_v63, %v1501_v28 }
0x20a7   :  { %v1572_v1 = vpop.permute.xlu1 %1571 }
0x20a8   :  { %v1574_v3 = vmul.f32 %v2500_v63, %v1572_v1 }
0x20aa   :  { %1576 = vrot.lane.b32.xlu0 %v1574_v3, %s2587_s22 }
0x211c   :  { %v1577_v0 = vpop.permute.xlu0 %1576 }
0x211d   :  { %v1579_v5 = vadd.f32 %v1577_v0, %v1569_v51 }
0x211f   :  { %2501 = vtanh.f32 %v1579_v5 }
0x2129   :  { %v2502_v6 = vpop.eup %2501 }
0x212a   :  { %1582 = vrot.lane.b32.xlu1 %v2502_v6, %s2586_s3 }
0x219c   :  { %v1583_v8 = vpop.permute.xlu1 %1582 }
0x219d   :  { %v3011_v9 = vmul.f32 %v2500_v63, %v1583_v8 }
0x219f   :  { %v1592_v10 = vpack.c.bf16 %v3011_v9, %v3011_v9 }
0x21a1   :  { %1594 = vrot.lane.b32.xlu0 %v1592_v10, %s2587_s22 }
0x2213   :  { %v1595_v11 = vpop.permute.xlu0 %1594 }
0x2214   :  { %2344 = vmatmul.mubr.msk.bf16.vlgmr.msra.gmra.mrb[40].mxu1 %vm290_vm5, %v1595_v11 }
0x2215   :  { %2356 = vmatpush3.bf16.msra.mxu1 %v2875_v41  ;;  %2359 = vmatprep.mubr.msk.bf16.mxu1 %vm2584_vm4, %v2583_v17 }
0x2216   :  { %2357 = vmatprep.subr.bf16.mxu1 %v2583_v17 }
0x2219   :  { %2358 = vmatpush3.bf16.msra.mxu1 %v2883_v42 }
0x22e7   :  { %v1633_v13 = vpop.f32.mrb[40].mxu1 }
0x22e8   :  { %v1639_v14 = vadd.f32 %v1633_v13, %v1177_v12  ;;  %v2345_v20 = vpop.f32.mrb[41].mxu1 }
0x22e9   :  { %v1636_v21 = vpop.f32.mrb[42].mxu1 }
0x22ea   :  { %2503 = vtanh.f32 %v1639_v14  ;;  %v2346_v45 = vpop.f32.mrb[43].mxu1  ;;  %v2103_v41 = vmul.f32 -1.442695, %v1639_v14 }
0x22ec   :  { %2505 = vpow2.f32 %v2103_v41 }
0x22f4   :  { %v2504_v22 = vpop.eup %2503 }
0x22f5   :  { %1649 = vrot.lane.b32.xlu1 %v2504_v22, %s2586_s3 }
0x22f6   :  { %v2506_v24 = vpop.eup %2505 }
0x22f7   :  { %v1643_v25 = vadd.f32 1.0, %v2506_v24 }
0x22f9   :  { %2507 = vrcp.f32 %v1643_v25 }
0x2303   :  { %v2508_v17 = vpop.eup %2507 }
0x2304   :  { %v1647_v2 = vmul.f32 %v2508_v17, %v1579_v5 }
0x2367   :  { %v1650_v54 = vpop.permute.xlu1 %1649 }
0x2368   :  { %v1652_v42 = vmul.f32 %v2508_v17, %v1650_v54 }
0x236a   :  { %1654 = vrot.lane.b32.xlu0 %v1652_v42, %s2587_s22 }
0x23dc   :  { %v1655_v26 = vpop.permute.xlu0 %1654 }
0x23dd   :  { %v1657_v29 = vadd.f32 %v1655_v26, %v1647_v2 }
0x23df   :  { %2509 = vtanh.f32 %v1657_v29 }
0x23e9   :  { %v2510_v27 = vpop.eup %2509 }
0x23ea   :  { %1660 = vrot.lane.b32.xlu1 %v2510_v27, %s2586_s3 }
0x245c   :  { %v1661_v30 = vpop.permute.xlu1 %1660 }
0x245d   :  { %v3027_v31 = vmul.f32 %v2508_v17, %v1661_v30  ;;  %v3079_v30 = vld [vmem:[#allocation4] ss:$0 sm:$0xff] }
0x245f   :  { %v1670_v23 = vpack.c.bf16 %v3027_v31, %v3027_v31 }
0x2461   :  { %1672 = vrot.lane.b32.xlu0 %v1670_v23, %s2587_s22 }
0x24d3   :  { %v1673_v4 = vpop.permute.xlu0 %1672 }
0x24d4   :  { %2352 = vmatmul.mubr.msk.bf16.vlgmr.msra.gmra.mrb[36].mxu0 %vm290_vm5, %v1673_v4 }
0x25a7   :  { %v1711_v34 = vpop.f32.mrb[36].mxu0 }
0x25a8   :  { %v1717_v35 = vadd.f32 %v1711_v34, %v1182_v32  ;;  %v2353_v36 = vpop.f32.mrb[37].mxu0 }
0x25a9   :  { %v1714_v48 = vpop.f32.mrb[38].mxu0 }
0x25aa   :  { %2511 = vtanh.f32 %v1717_v35  ;;  %v2354_v33 = vpop.f32.mrb[39].mxu0  ;;  %v2105_v38 = vmul.f32 -1.442695, %v1717_v35 }
0x25ac   :  { %2513 = vpow2.f32 %v2105_v38 }
0x25b4   :  { %v2512_v37 = vpop.eup %2511 }
0x25b5   :  { %1727 = vrot.lane.b32.xlu1 %v2512_v37, %s2586_s3 }
0x25b6   :  { %v2514_v46 = vpop.eup %2513 }
0x25b7   :  { %v1721_v43 = vadd.f32 1.0, %v2514_v46 }
0x25b9   :  { %2515 = vrcp.f32 %v1721_v43 }
0x25c3   :  { %v2516_v28 = vpop.eup %2515 }
0x25c4   :  { %v1725_v62 = vmul.f32 %v2516_v28, %v1657_v29 }
0x2627   :  { %v1728_v39 = vpop.permute.xlu1 %1727 }
0x2628   :  { %v1730_v40 = vmul.f32 %v2516_v28, %v1728_v39 }
0x262a   :  { %1732 = vrot.lane.b32.xlu0 %v1730_v40, %s2587_s22 }
0x269c   :  { %v1733_v60 = vpop.permute.xlu0 %1732 }
0x269d   :  { %v1735_v47 = vadd.f32 %v1733_v60, %v1725_v62 }
0x269f   :  { %2517 = vtanh.f32 %v1735_v47 }
0x26a9   :  { %v2518_v49 = vpop.eup %2517 }
0x26aa   :  { %1738 = vrot.lane.b32.xlu1 %v2518_v49, %s2586_s3 }
0x271c   :  { %v1739_v19 = vpop.permute.xlu1 %1738 }
0x271d   :  { %v1741_v52 = vmul.f32 %v2516_v28, %v1739_v19 }
0x271f   :  { %v1748_v53 = vpack.c.bf16 %v1741_v52, %v1741_v52 }
0x2721   :  { %1750 = vrot.lane.b32.xlu0 %v1748_v53, %s2587_s22 }
0x2793   :  { %v1751_v56 = vpop.permute.xlu0 %1750 }
0x2794   :  { %2360 = vmatmul.mubr.msk.bf16.vlgmr.msra.gmra.mrb[44].mxu1 %vm290_vm5, %v1751_v56 }
0x2867   :  { %v1789_v59 = vpop.f32.mrb[44].mxu1 }
0x2868   :  { %v1795_v7 = vadd.f32 %v1789_v59, %v1185_v57  ;;  %v2361_v16 = vpop.f32.mrb[45].mxu1 }
0x2869   :  { %v1792_v61 = vpop.f32.mrb[46].mxu1 }
0x286a   :  { %2519 = vtanh.f32 %v1795_v7  ;;  %v2362_v63 = vpop.f32.mrb[47].mxu1  ;;  %v2107_v3 = vmul.f32 -1.442695, %v1795_v7 }
0x286c   :  { %2521 = vpow2.f32 %v2107_v3 }
0x2874   :  { %v2520_v1 = vpop.eup %2519 }
0x2875   :  { %1805 = vrot.lane.b32.xlu1 %v2520_v1, %s2586_s3 }
0x2876   :  { %v2522_v51 = vpop.eup %2521 }
0x2877   :  { %v1799_v0 = vadd.f32 1.0, %v2522_v51 }
0x2879   :  { %2523 = vrcp.f32 %v1799_v0 }
0x2883   :  { %v2524_v5 = vpop.eup %2523 }
0x2884   :  { %v1803_v55 = vmul.f32 %v2524_v5, %v1735_v47 }
0x28e7   :  { %v1806_v6 = vpop.permute.xlu1 %1805 }
0x28e8   :  { %v1808_v8 = vmul.f32 %v2524_v5, %v1806_v6 }
0x28ea   :  { %1810 = vrot.lane.b32.xlu0 %v1808_v8, %s2587_s22 }
0x28ee   :  { %1275 = vrot.lane.b32.xlu0 %v2918_v15, %s2587_s22  ;;  %v3056_v15 = vld [vmem:[%s3118_s8] ss:$0 sm:$0xff]  ;;  %s2588_s8 = smov [#allocation5]  }
0x28ef   :  { %s2024_s11 = sshll.u32 %s2588_s8, 4  ;;  %s2025_s11 = int_to_ptr.vmem [resolvable:$true] %s2024_s11 }
0x28f0   :  { %s2559_s1 = scalar_lea.vmem %s2025_s11, 128  ;;  %p2564_p1 = scmp.lt.s32.totalorder %s2025_s11, %s2025_s11 }
0x28f1   :  { %p2560_p0 = scmp.ne.s32.totalorder %s2025_s11, %s2559_s1  ;;  %p2565_p2 = scmp.lt.s32.totalorder %s2559_s1, %s2559_s1 }
0x28f2   :  { %1431 = vrot.lane.b32.xlu0 %v2978_v58, %s2587_s22 }
0x28f3   :  { %p2566_p3 = por %p2565_p2, %p2564_p1 }
0x28f5   :  { %p2567_p4 = pnand %p2566_p3, %p2560_p0 }
0x28f6   :  { %1587 = vrot.lane.b32.xlu0 %v3011_v9, %s2587_s22 }
0x28fa   :  { %1743 = vrot.lane.b32.xlu0 %v1741_v52, %s2587_s22 }
0x295c   :  { %v1811_v18 = vpop.permute.xlu0 %1810 }
0x295d   :  { %v1813_v10 = vadd.f32 %v1811_v18, %v1803_v55 }
0x295f   :  { %2525 = vtanh.f32 %v1813_v10 }
0x2960   :  { %v1276_v11 = vpop.permute.xlu0 %1275 }
0x2961   :  { %1278 = vst.msk [vmem:[#allocation2] sm:$0xff] %vm290_vm5, %v1276_v11 }
0x2964   :  { %v1432_v12 = vpop.permute.xlu0 %1431 }
0x2965   :  { %1434 = vst.msk [vmem:[#allocation2 + $0x10] sm:$0xff] %vm290_vm5, %v1432_v12 }
0x2968   :  { %v1588_v58 = vpop.permute.xlu0 %1587  ;;  %v1825_v13 = vld [vmem:[#allocation2] sm:$0xff] }
0x2969   :  { %v2526_v9 = vpop.eup %2525  ;;  %1590 = vst.msk [vmem:[#allocation2 + $0x20] sm:$0xff] %vm290_vm5, %v1588_v58  ;;  %v1840_v14 = vmul.f32 %v3056_v15, %v1825_v13 }
0x296a   :  { %1816 = vrot.lane.b32.xlu1 %v2526_v9, %s2586_s3 }
0x296b   :  { %v1848_v20 = vsel %vm290_vm5, %v1840_v14, 0.0 }
0x296c   :  { %1849 = vadd.xlane.f32.xlu0 %v1848_v20  ;;  %v1744_v21 = vpop.permute.xlu0 %1743  ;;  %v1827_v45 = vld [vmem:[#allocation2 + $0x10] sm:$0xff] }
0x296d   :  { %1746 = vst.msk [vmem:[#allocation2 + $0x30] sm:$0xff] %vm290_vm5, %v1744_v21  ;;  %v1842_v22 = vmul.f32 %v3056_v15, %v1827_v45 }
0x296e   :  { %1353 = vrot.lane.b32.xlu1 %v2947_v50, %s2587_s22 }
0x296f   :  { %v1854_v41 = vsel %vm290_vm5, %v1842_v22, 0.0 }
0x2970   :  { %1855 = vadd.xlane.f32.xlu0 %v1854_v41  ;;  %v1829_v48 = vld [vmem:[#allocation2 + $0x20] sm:$0xff] }
0x2971   :  { %v1844_v38 = vmul.f32 %v3056_v15, %v1829_v48 }
0x2972   :  { %1509 = vrot.lane.b32.xlu1 %v2995_v44, %s2587_s22 }
0x2973   :  { %v1860_v43 = vsel %vm290_vm5, %v1844_v38, 0.0 }
0x2974   :  { %v1831_v46 = vld [vmem:[#allocation2 + $0x30] sm:$0xff] }
0x2975   :  { %v1846_v28 = vmul.f32 %v3056_v15, %v1831_v46 }
0x2976   :  { %1665 = vrot.lane.b32.xlu1 %v3027_v31, %s2587_s22 }
0x2977   :  { %v1866_v40 = vsel %vm290_vm5, %v1846_v28, 0.0 }
0x29dc   :  { %v1817_v24 = vpop.permute.xlu1 %1816 }
0x29dd   :  { %v1819_v25 = vmul.f32 %v2524_v5, %v1817_v24 }
0x29df   :  { %1821 = vrot.lane.b32.xlu1 %v1819_v25, %s2587_s22 }
0x29e0   :  { %v1354_v17 = vpop.permute.xlu1 %1353 }
0x29e1   :  { %1356 = vst.msk [vmem:[#allocation2 + $0x8] sm:$0xff] %vm290_vm5, %v1354_v17 }
0x29e4   :  { %v1510_v54 = vpop.permute.xlu1 %1509 }
0x29e5   :  { %1512 = vst.msk [vmem:[#allocation2 + $0x18] sm:$0xff] %vm290_vm5, %v1510_v54 }
0x29e8   :  { %v1666_v50 = vpop.permute.xlu1 %1665  ;;  %v1826_v4 = vld [vmem:[#allocation2 + $0x8] sm:$0xff] }
0x29e9   :  { %1668 = vst.msk [vmem:[#allocation2 + $0x28] sm:$0xff] %vm290_vm5, %v1666_v50  ;;  %v1841_v36 = vmul.f32 %v3056_v15, %v1826_v4 }
0x29eb   :  { %v1851_v37 = vsel %vm290_vm5, %v1841_v36, 0.0 }
0x29ec   :  { %v1828_v42 = vld [vmem:[#allocation2 + $0x18] sm:$0xff] }
0x29ed   :  { %v1843_v2 = vmul.f32 %v3056_v15, %v1828_v42 }
0x29ef   :  { %v1857_v44 = vsel %vm290_vm5, %v1843_v2, 0.0 }
0x29f0   :  { %1858 = vadd.xlane.f32.xlu0 %v1857_v44  ;;  %v1830_v26 = vld [vmem:[#allocation2 + $0x28] sm:$0xff] }
0x29f1   :  { %v1845_v29 = vmul.f32 %v3056_v15, %v1830_v26 }
0x29f3   :  { %v1863_v27 = vsel %vm290_vm5, %v1845_v29, 0.0 }
0x29f4   :  { %1864 = vadd.xlane.f32.xlu0 %v1863_v27 }
0x29f9   :  { %v1850_v31 = vpop.xlane.xlu0 %1849 }
0x29fa   :  { %v1879_v23 = vadd.f32 %v3079_v30, %v1850_v31  ;;  %v1967_v31 = vlaneseq }
0x29fc   :  { %v2110_v32 = vmul.f32 -1.442695, %v1879_v23  ;;  %v1968_v4 = vand.u32 127, %v1967_v31 }
0x29fd   :  { %v1856_v34 = vpop.xlane.xlu0 %1855 }
0x29fe   :  { %v1881_v35 = vadd.f32 %v3079_v30, %v1856_v34  ;;  %2527 = vpow2.f32 %v2110_v32  ;;  %v1970_v32 = vshrl.u32 %v1967_v31, 7 }
0x2a00   :  { %v2112_v33 = vmul.f32 -1.442695, %v1881_v35  ;;  %v1971_v36 = vsub.s32 %v1968_v4, %v1970_v32 }
0x2a02   :  { %2529 = vpow2.f32 %v2112_v33 }
0x2a03   :  { %1852 = vadd.xlane.f32.xlu1 %v1851_v37 }
0x2a07   :  { %1861 = vadd.xlane.f32.xlu1 %v1860_v43 }
0x2a08   :  { %v2528_v39 = vpop.eup %2527 }
0x2a09   :  { %v1911_v62 = vadd.f32 1.0, %v2528_v39 }
0x2a0b   :  { %1867 = vadd.xlane.f32.xlu1 %v1866_v40  ;;  %2531 = vrcp.f32 %v1911_v62 }
0x2a0c   :  { %v2530_v60 = vpop.eup %2529 }
0x2a0d   :  { %v1913_v47 = vadd.f32 1.0, %v2530_v60 }
0x2a0f   :  { %2533 = vrcp.f32 %v1913_v47 }
0x2a15   :  { %v2532_v49 = vpop.eup %2531 }
0x2a19   :  { %v2534_v19 = vpop.eup %2533 }
0x2a1c   :  { %1944 = vperm.xlu1 %2379, %v2532_v49  }
0x2a20   :  { %1950 = vperm.xlu1 %2379, %v2534_v19  }
0x2a51   :  { %v1822_v52 = vpop.permute.xlu1 %1821 }
0x2a52   :  { %1824 = vst.msk [vmem:[#allocation2 + $0x38] sm:$0xff] %vm290_vm5, %v1822_v52 }
0x2a59   :  { %v1832_v53 = vld [vmem:[#allocation2 + $0x38] sm:$0xff] }
0x2a5a   :  { %v1847_v56 = vmul.f32 %v3056_v15, %v1832_v53 }
0x2a5c   :  { %v1869_v57 = vsel %vm290_vm5, %v1847_v56, 0.0 }
0x2a5d   :  { %1870 = vadd.xlane.f32.xlu0 %v1869_v57 }
0x2a7d   :  { %v1859_v59 = vpop.xlane.xlu0 %1858 }
0x2a7e   :  { %v1882_v7 = vadd.f32 %v3079_v30, %v1859_v59 }
0x2a80   :  { %v2113_v16 = vmul.f32 -1.442695, %v1882_v7 }
0x2a81   :  { %v1865_v1 = vpop.xlane.xlu0 %1864 }
0x2a82   :  { %2535 = vpow2.f32 %v2113_v16  ;;  %v1884_v3 = vadd.f32 %v3079_v30, %v1865_v1 }
0x2a84   :  { %v2115_v6 = vmul.f32 -1.442695, %v1884_v3 }
0x2a8c   :  { %v2536_v61 = vpop.eup %2535 }
0x2a8d   :  { %v1914_v63 = vadd.f32 1.0, %v2536_v61 }
0x2a8f   :  { %2537 = vrcp.f32 %v1914_v63 }
0x2a90   :  { %v1853_v51 = vpop.xlane.xlu1 %1852 }
0x2a91   :  { %v1880_v0 = vadd.f32 %v3079_v30, %v1853_v51 }
0x2a93   :  { %v2111_v5 = vmul.f32 -1.442695, %v1880_v0 }
0x2a94   :  { %v1862_v8 = vpop.xlane.xlu1 %1861 }
0x2a95   :  { %2539 = vpow2.f32 %v2111_v5  ;;  %v1883_v55 = vadd.f32 %v3079_v30, %v1862_v8 }
0x2a96   :  { %2541 = vpow2.f32 %v2115_v6 }
0x2a97   :  { %v2114_v18 = vmul.f32 -1.442695, %v1883_v55 }
0x2a98   :  { %v1868_v10 = vpop.xlane.xlu1 %1867 }
0x2a99   :  { %v2538_v11 = vpop.eup %2537  ;;  %2543 = vpow2.f32 %v2114_v18  ;;  %v1885_v12 = vadd.f32 %v3079_v30, %v1868_v10 }
0x2a9a   :  { %1953 = vperm.xlu1 %2379, %v2538_v11  }
0x2a9b   :  { %v2116_v15 = vmul.f32 -1.442695, %v1885_v12 }
0x2a9c   :  { %v1945_v29 = vpop.permute.xlu1 %1944 }
0x2a9d   :  { %2545 = vpow2.f32 %v2116_v15  ;;  %v1972_v33 = vrot.slane %v1945_v29, %v1971_v36 }
0x2a9f   :  { %v2540_v58 = vpop.eup %2539 }
0x2aa0   :  { %v1912_v13 = vadd.f32 1.0, %v2540_v58  ;;  %v2542_v9 = vpop.eup %2541  ;;  %v1951_v27 = vpop.permute.xlu1 %1950 }
0x2aa1   :  { %v1916_v21 = vadd.f32 1.0, %v2542_v9  ;;  %v1980_v38 = vrot.slane %v1951_v27, %v1971_v36 }
0x2aa2   :  { %2547 = vrcp.f32 %v1912_v13 }
0x2aa3   :  { %v2544_v14 = vpop.eup %2543 }
0x2aa4   :  { %v1915_v20 = vadd.f32 1.0, %v2544_v14 }
0x2aa6   :  { %2549 = vrcp.f32 %v1915_v20 }
0x2aa7   :  { %v2546_v45 = vpop.eup %2545  ;;  %2551 = vrcp.f32 %v1916_v21 }
0x2aa8   :  { %v1917_v22 = vadd.f32 1.0, %v2546_v45 }
0x2aaa   :  { %2553 = vrcp.f32 %v1917_v22 }
0x2aac   :  { %v2548_v41 = vpop.eup %2547 }
0x2aad   :  { %1947 = vperm.xlu0 %2380, %v2548_v41  }
0x2ab0   :  { %v2550_v24 = vpop.eup %2549 }
0x2ab1   :  { %1956 = vperm.xlu1 %2379, %v2550_v24   ;;  %v2552_v25 = vpop.eup %2551 }
0x2ab4   :  { %v2554_v17 = vpop.eup %2553 }
0x2ab5   :  { %1959 = vperm.xlu1 %2379, %v2552_v25  }
0x2ab9   :  { %1962 = vperm.xlu1 %2379, %v2554_v17  }
0x2aea   :  { %v1871_v54 = vpop.xlane.xlu0 %1870 }
0x2aeb   :  { %v1886_v50 = vadd.f32 %v3079_v30, %v1871_v54 }
0x2aed   :  { %v2117_v42 = vmul.f32 -1.442695, %v1886_v50 }
0x2aef   :  { %2555 = vpow2.f32 %v2117_v42 }
0x2af9   :  { %v2556_v2 = vpop.eup %2555 }
0x2afa   :  { %v1918_v44 = vadd.f32 1.0, %v2556_v2 }
0x2afc   :  { %2557 = vrcp.f32 %v1918_v44 }
0x2b06   :  { %v2558_v26 = vpop.eup %2557 }
0x2b07   :  { %1965 = vperm.xlu1 %2379, %v2558_v26  }
0x2b19   :  { %v1954_v23 = vpop.permute.xlu1 %1953 }
0x2b1a   :  { %v1984_v43 = vrot.slane %v1954_v23, %v1971_v36 }
0x2b2c   :  { %v1948_v35 = vpop.permute.xlu0 %1947 }
0x2b2d   :  { %v1976_v48 = vrot.slane %v1948_v35, %v1971_v36 }
0x2b2f   :  { %v2002_v37 = vsel %vm2001_vm6, %v1976_v48, %v1972_v33 }
0x2b30   :  { %v1957_v34 = vpop.permute.xlu1 %1956  ;;  %v2004_v46 = vsel %vm2003_vm7, %v1980_v38, %v2002_v37 }
0x2b31   :  { %v1988_v39 = vrot.slane %v1957_v34, %v1971_v36  ;;  %v2006_v40 = vsel %vm2005_vm8, %v1984_v43, %v2004_v46 }
0x2b33   :  { %v2008_v47 = vsel %vm2007_vm9, %v1988_v39, %v2006_v40 }
0x2b34   :  { %v1960_v30 = vpop.permute.xlu1 %1959 }
0x2b35   :  { %v1992_v62 = vrot.slane %v1960_v30, %v1971_v36 }
0x2b37   :  { %v2010_v19 = vsel %vm2009_vm10, %v1992_v62, %v2008_v47 }
0x2b38   :  { %v1963_v28 = vpop.permute.xlu1 %1962 }
0x2b39   :  { %v1996_v60 = vrot.slane %v1963_v28, %v1971_v36 }
0x2b3b   :  { %v2012_v53 = vsel %vm2011_vm11, %v1996_v60, %v2010_v19 }
0x2b86   :  { %v1966_v49 = vpop.permute.xlu1 %1965 }
0x2b87   :  { %v2000_v52 = vrot.slane %v1966_v49, %v1971_v36 }
0x2b89   :  { %v2014_v56 = vsel %vm2013_vm12, %v2000_v52, %v2012_v53 }
0x2b8a   :  { %2017 = vst.msk [vmem:[#allocation5] sm:$0xff] %vm2016_vm13, %v2014_v56 }
0x2b8b   :  { %2570 = shalt.err (!%p2567_p4)
}
0x2b8c   :  { %s2571_s14 = scalar_lea.hbm %s3120_s10, 128 }
0x2b8d   :  { %p2572_p5 = scmp.ne.s32.totalorder %s3120_s10, %s2571_s14  ;;  %p2575_p6 = scmp.lt.u32.totalorder %s2571_s14, %s3120_s10 }
0x2b8f   :  { %p2577_p7 = pnand %p2575_p6, %p2572_p5 }
0x2b91   :  { %2580 = shalt.err (!%p2577_p7)
}
0x2b92   :  { %2027 = dma.vmem_to_hbm [thread:$0]  %s2025_s11, 128, %s3120_s10, [#allocation6]  }
0x2b93   :  { %2581 = dma.done.wait [#allocation6], 128  }
0x2b94   :  { %2582 = vsyncadd [#allocation6], 4294967168 }
0x2b95   :  { %2031 = vsyncpa [#allocation6], 1 }

</bundles_post_ra>
